<compile_context>
chip_gen: v7x
topology: tpu7x:2x2x1
jax: 0.10.0
libtpu: 0.0.40
codegen_flags: <defaults>
</compile_context>

<pallas_src>
import jax
import jax.numpy as jnp
from jax.experimental import pallas as pl
from jax.experimental.pallas import tpu as pltpu


def mgvse_kernel(joint_ref, scale_ref, w12_ref, b12_ref, wg_ref, bg_ref, out_ref):
    tb, n, d = joint_ref.shape

    # joint + joint * node_embed == joint * (1 + node_embed)   (fp32)
    x = joint_ref[...] * scale_ref[...]            # (TB, N, D), scale broadcast over TB
    x_bf = x.astype(jnp.bfloat16)
    x_flat = x_bf.reshape(tb * n, d)               # (TB*N, D) — tall MXU M-dim

    # --- AdjMatrixEdgeLearner: fused projections + bilinear + row-softmax ---
    h12 = jnp.dot(x_flat, w12_ref[...],
                  preferred_element_type=jnp.float32) + b12_ref[...]   # (TB*N, 2D)
    h12 = h12.reshape(tb, n, 2 * d)
    h1 = h12[:, :, :d].astype(jnp.bfloat16)
    h2 = h12[:, :, d:].astype(jnp.bfloat16)
    # contracting-dim batched matmul; no explicit transpose of h2
    logits = jnp.einsum("bnd,bmd->bnm", h1, h2,
                        preferred_element_type=jnp.float32)            # (TB, N, N)

    m = jnp.max(logits, axis=-1, keepdims=True)
    e = jnp.exp(logits - m)
    adj = e / jnp.sum(e, axis=-1, keepdims=True)                       # fp32 row-softmax

    # --- GCNEncoder (1 hidden layer, embed_first=False, dropout=0) ---
    ax = jnp.einsum("bnm,bmd->bnd", adj.astype(jnp.bfloat16), x_bf,
                    preferred_element_type=jnp.float32)                # (TB, N, D)
    h = jnp.dot(ax.reshape(tb * n, d).astype(jnp.bfloat16), wg_ref[...],
                preferred_element_type=jnp.float32) + bg_ref[...]      # (TB*N, D)
    h = jnp.maximum(h, 0.0).reshape(tb, n, d)

    # mean over the node axis -> (TB, D), sublane/lane-dense output block
    out_ref[...] = jnp.mean(h, axis=1)


def _pick_tb(bs):
    # Largest fold that divides bs while keeping >= 2 parallel grid steps
    # (so both TensorCores get work on v7x).
    for tb in (8, 4, 2, 1):
        if bs % tb == 0 and bs // tb >= 2:
            return tb
    return bs


def mgvse_forward(vis_obj, vis_img, sem_role, sem_sent, params, tb=None):
    bs, n_img, D = vis_obj.shape
    n_know = sem_role.shape[1]
    N = 2 * n_img + 2 * n_know
    if tb is None:
        tb = _pick_tb(bs)
    assert bs % tb == 0
    grid_len = bs // tb

    # Glue (outside the kernel): concat along node axis + node-type embedding
    # gather (node types depend only on position, so 'scale' is shared by all
    # batch elements).
    joint = jnp.concatenate([vis_obj, vis_img, sem_role, sem_sent], axis=1)
    node_type = jnp.concatenate([
        jnp.zeros((n_img,), jnp.int32),
        jnp.ones((n_img,), jnp.int32),
        jnp.full((n_know,), 2, jnp.int32),
        jnp.full((n_know,), 3, jnp.int32),
    ])
    scale = 1.0 + params["node_embedding"][node_type]          # (N, D) fp32

    # Fuse the two edge-learner projections into one 2D-wide matmul (bf16 MXU
    # inputs, fp32 accumulation; biases stay fp32 and are added post-matmul).
    w12 = jnp.concatenate([params["adj_w1"], params["adj_w2"]], axis=1).astype(jnp.bfloat16)
    b12 = jnp.concatenate([params["adj_b1"], params["adj_b2"]], axis=1)      # (1, 2D) fp32
    wg = params["gcn_w"].astype(jnp.bfloat16)
    bg = params["gcn_b"]

    # Cost estimate: projections (2*N*D*2D) + bilinear (2*N*N*D) + A@X (2*N*N*D)
    # + GCN (2*N*D*D) per batch element; exp per adjacency entry.
    flops = bs * (6 * N * D * D + 4 * N * N * D)
    transcendentals = bs * N * N
    bytes_accessed = (bs * N * D * 4 + N * D * 4            # joint + scale
                      + D * 2 * D * 2 + D * D * 2           # bf16 weights
                      + 2 * D * 4 + D * 4                   # biases
                      + bs * D * 4)                         # output

    return pl.pallas_call(
        mgvse_kernel,
        out_shape=jax.ShapeDtypeStruct((bs, D), jnp.float32),
        grid=(grid_len,),
        in_specs=[
            pl.BlockSpec((tb, N, D), lambda b: (b, 0, 0)),   # joint embed (TB batches)
            # Constant-index blocks below stay VMEM-resident across grid steps
            # (same block index every iteration -> no per-step re-DMA).
            pl.BlockSpec((N, D), lambda b: (0, 0)),          # 1 + node embedding
            pl.BlockSpec((D, 2 * D), lambda b: (0, 0)),      # fused W1|W2 (bf16)
            pl.BlockSpec((1, 2 * D), lambda b: (0, 0)),      # fused b1|b2
            pl.BlockSpec((D, D), lambda b: (0, 0)),          # GCN W (bf16)
            pl.BlockSpec((1, D), lambda b: (0, 0)),          # GCN b
        ],
        out_specs=pl.BlockSpec((tb, D), lambda b: (b, 0)),
        compiler_params=pltpu.CompilerParams(
            dimension_semantics=("parallel",)),
        cost_estimate=pl.CostEstimate(
            flops=int(flops),
            transcendentals=int(transcendentals),
            bytes_accessed=int(bytes_accessed)),
    )(joint, scale, w12, b12, wg, bg)


def mgvse_reference(vis_obj, vis_img, sem_role, sem_sent, params):
    """Pure-JAX fp32 reference of the same forward pass."""
    n_img, n_know = vis_obj.shape[1], sem_role.shape[1]
    joint = jnp.concatenate([vis_obj, vis_img, sem_role, sem_sent], axis=1)
    node_type = jnp.concatenate([
        jnp.zeros((n_img,), jnp.int32),
        jnp.ones((n_img,), jnp.int32),
        jnp.full((n_know,), 2, jnp.int32),
        jnp.full((n_know,), 3, jnp.int32),
    ])
    x = joint * (1.0 + params["node_embedding"][node_type])
    h1 = x @ params["adj_w1"] + params["adj_b1"]
    h2 = x @ params["adj_w2"] + params["adj_b2"]
    adj = jax.nn.softmax(jnp.einsum("bnd,bmd->bnm", h1, h2), axis=-1)
    ax = jnp.einsum("bnm,bmd->bnd", adj, x)
    h = jnp.maximum(ax @ params["gcn_w"] + params["gcn_b"], 0.0)
    return h.mean(axis=1)


def init_params(key, hidden_dim):
    ks = jax.random.split(key, 6)
    s = 0.02
    return {
        "node_embedding": s * jax.random.normal(ks[0], (4, hidden_dim), jnp.float32),
        "adj_w1": s * jax.random.normal(ks[1], (hidden_dim, hidden_dim), jnp.float32),
        "adj_b1": jnp.zeros((1, hidden_dim), jnp.float32),
        "adj_w2": s * jax.random.normal(ks[2], (hidden_dim, hidden_dim), jnp.float32),
        "adj_b2": jnp.zeros((1, hidden_dim), jnp.float32),
        "gcn_w": s * jax.random.normal(ks[3], (hidden_dim, hidden_dim), jnp.float32),
        "gcn_b": jnp.zeros((1, hidden_dim), jnp.float32),
    }


if __name__ == "__main__":
    key = jax.random.PRNGKey(0)
    # bs=16, TB=8 -> grid=(2,): (8,128) dense output blocks and 2 parallel
    # steps (keeps both v7x TensorCores busy). N = 2*8 + 2*8 = 32 nodes.
    bs, n_img, n_know, D = 16, 8, 8, 128

    kp, k1, k2, k3, k4 = jax.random.split(key, 5)
    params = init_params(kp, D)

    vis_obj = jax.random.normal(k1, (bs, n_img, D), jnp.float32)
    vis_img = jax.random.normal(k2, (bs, n_img, D), jnp.float32)
    sem_role = jax.random.normal(k3, (bs, n_know, D), jnp.float32)
    sem_sent = jax.random.normal(k4, (bs, n_know, D), jnp.float32)

    out = mgvse_forward(vis_obj, vis_img, sem_role, sem_sent, params)
    jax.block_until_ready(out)
    assert out.shape == (bs, D)

    ref = mgvse_reference(vis_obj, vis_img, sem_role, sem_sent, params)
    assert bool(jnp.allclose(out, ref, rtol=1e-1, atol=2e-2)), "mismatch vs reference"

    print("KERNEL_OK")
</pallas_src>

<mosaic_0001>
module attributes {stable_mosaic.version = 11 : i64} {
  func.func @mgvse_kernel(%arg0: i32, %arg1: memref<8x32x128xf32, #tpu.memory_space<vmem>>, %arg2: memref<32x128xf32, #tpu.memory_space<vmem>>, %arg3: memref<128x256xbf16, #tpu.memory_space<vmem>>, %arg4: memref<1x256xf32, #tpu.memory_space<vmem>>, %arg5: memref<128x128xbf16, #tpu.memory_space<vmem>>, %arg6: memref<1x128xf32, #tpu.memory_space<vmem>>, %arg7: memref<8x128xf32, #tpu.memory_space<vmem>>) attributes {dimension_semantics = [#tpu.dimension_semantics<parallel>], iteration_bounds = array<i64: 2>, scalar_prefetch = 0 : i64, scratch_operands = 0 : i64, tpu.core_type = #tpu.core_type<tc>, window_params = [{transform_indices = @transform_0, window_bounds = array<i64: 8, 32, 128>}, {pipeline_mode = #tpu.pipeline_mode<synchronous>, transform_indices = @transform_1, window_bounds = array<i64: 32, 128>}, {pipeline_mode = #tpu.pipeline_mode<synchronous>, transform_indices = @transform_2, window_bounds = array<i64: 128, 256>}, {pipeline_mode = #tpu.pipeline_mode<synchronous>, transform_indices = @transform_3, window_bounds = array<i64: 1, 256>}, {pipeline_mode = #tpu.pipeline_mode<synchronous>, transform_indices = @transform_4, window_bounds = array<i64: 128, 128>}, {pipeline_mode = #tpu.pipeline_mode<synchronous>, transform_indices = @transform_5, window_bounds = array<i64: 1, 128>}, {transform_indices = @transform_6, window_bounds = array<i64: 8, 128>}]} {
    %c0 = arith.constant 0 : index
    %c0_0 = arith.constant 0 : index
    %c0_1 = arith.constant 0 : index
    %0 = vector.load %arg1[%c0, %c0_0, %c0_1] : memref<8x32x128xf32, #tpu.memory_space<vmem>>, vector<8x32x128xf32>
    %c0_2 = arith.constant 0 : index
    %c0_3 = arith.constant 0 : index
    %1 = vector.load %arg2[%c0_2, %c0_3] : memref<32x128xf32, #tpu.memory_space<vmem>>, vector<32x128xf32>
    %2 = vector.shape_cast %1 : vector<32x128xf32> to vector<1x32x128xf32>
    %3 = vector.broadcast %2 : vector<1x32x128xf32> to vector<8x32x128xf32>
    %4 = arith.mulf %0, %3 : vector<8x32x128xf32>
    %5 = arith.truncf %4 : vector<8x32x128xf32> to vector<8x32x128xbf16>
    %6 = vector.shape_cast %5 : vector<8x32x128xbf16> to vector<256x128xbf16>
    %c0_4 = arith.constant 0 : index
    %c0_5 = arith.constant 0 : index
    %7 = vector.load %arg3[%c0_4, %c0_5] : memref<128x256xbf16, #tpu.memory_space<vmem>>, vector<128x256xbf16>
    %cst = arith.constant dense<0.000000e+00> : vector<256x256xf32>
    %8 = tpu.matmul %6, %7, %cst {dimension_numbers = #tpu.dot_dimension_numbers<[1], [0], [0], [1], [0, 0, 1, 1], [], []>} : vector<256x128xbf16>, vector<128x256xbf16>, vector<256x256xf32> -> vector<256x256xf32>
    %c0_6 = arith.constant 0 : index
    %c0_7 = arith.constant 0 : index
    %9 = vector.load %arg4[%c0_6, %c0_7] : memref<1x256xf32, #tpu.memory_space<vmem>>, vector<1x256xf32>
    %10 = vector.broadcast %9 : vector<1x256xf32> to vector<256x256xf32>
    %11 = arith.addf %8, %10 : vector<256x256xf32>
    %12 = vector.shape_cast %11 : vector<256x256xf32> to vector<8x32x256xf32>
    %13 = vector.extract_strided_slice %12 {offsets = [0, 0, 0], sizes = [8, 32, 128], strides = [1, 1, 1]} : vector<8x32x256xf32> to vector<8x32x128xf32>
    %14 = arith.truncf %13 : vector<8x32x128xf32> to vector<8x32x128xbf16>
    %15 = vector.extract_strided_slice %12 {offsets = [0, 0, 128], sizes = [8, 32, 128], strides = [1, 1, 1]} : vector<8x32x256xf32> to vector<8x32x128xf32>
    %16 = arith.truncf %15 : vector<8x32x128xf32> to vector<8x32x128xbf16>
    "tpu.trace_start"() <{level = 10 : i32, message = "bnd,bmd->bnm"}> : () -> ()
    %cst_8 = arith.constant dense<0.000000e+00> : vector<8x32x32xf32>
    %17 = tpu.matmul %14, %16, %cst_8 {dimension_numbers = #tpu.dot_dimension_numbers<[2], [2], [1], [1], [0, 0, 0, 1, 1, 1], [0], [0]>} : vector<8x32x128xbf16>, vector<8x32x128xbf16>, vector<8x32x32xf32> -> vector<8x32x32xf32>
    "tpu.trace_stop"() : () -> ()
    %cst_9 = arith.constant dense<0xFF800000> : vector<8x32xf32>
    %18 = vector.multi_reduction <maximumf>, %17, %cst_9 [2] : vector<8x32x32xf32> to vector<8x32xf32>
    %19 = vector.shape_cast %18 : vector<8x32xf32> to vector<8x32x1xf32>
    %20 = vector.broadcast %19 : vector<8x32x1xf32> to vector<8x32x32xf32>
    %21 = arith.subf %17, %20 : vector<8x32x32xf32>
    %22 = math.exp %21 : vector<8x32x32xf32>
    %cst_10 = arith.constant dense<0.000000e+00> : vector<8x32xf32>
    %23 = vector.multi_reduction <add>, %22, %cst_10 [2] : vector<8x32x32xf32> to vector<8x32xf32>
    %24 = vector.shape_cast %23 : vector<8x32xf32> to vector<8x32x1xf32>
    %25 = vector.broadcast %24 : vector<8x32x1xf32> to vector<8x32x32xf32>
    %26 = arith.divf %22, %25 : vector<8x32x32xf32>
    %27 = arith.truncf %26 : vector<8x32x32xf32> to vector<8x32x32xbf16>
    "tpu.trace_start"() <{level = 10 : i32, message = "bnm,bmd->bnd"}> : () -> ()
    %cst_11 = arith.constant dense<0.000000e+00> : vector<8x32x128xf32>
    %28 = tpu.matmul %27, %5, %cst_11 {dimension_numbers = #tpu.dot_dimension_numbers<[2], [1], [1], [2], [0, 0, 0, 1, 1, 2], [0], [0]>} : vector<8x32x32xbf16>, vector<8x32x128xbf16>, vector<8x32x128xf32> -> vector<8x32x128xf32>
    "tpu.trace_stop"() : () -> ()
    %29 = vector.shape_cast %28 : vector<8x32x128xf32> to vector<256x128xf32>
    %30 = arith.truncf %29 : vector<256x128xf32> to vector<256x128xbf16>
    %c0_12 = arith.constant 0 : index
    %c0_13 = arith.constant 0 : index
    %31 = vector.load %arg5[%c0_12, %c0_13] : memref<128x128xbf16, #tpu.memory_space<vmem>>, vector<128x128xbf16>
    %cst_14 = arith.constant dense<0.000000e+00> : vector<256x128xf32>
    %32 = tpu.matmul %30, %31, %cst_14 {dimension_numbers = #tpu.dot_dimension_numbers<[1], [0], [0], [1], [0, 0, 1, 1], [], []>} : vector<256x128xbf16>, vector<128x128xbf16>, vector<256x128xf32> -> vector<256x128xf32>
    %c0_15 = arith.constant 0 : index
    %c0_16 = arith.constant 0 : index
    %33 = vector.load %arg6[%c0_15, %c0_16] : memref<1x128xf32, #tpu.memory_space<vmem>>, vector<1x128xf32>
    %34 = vector.broadcast %33 : vector<1x128xf32> to vector<256x128xf32>
    %35 = arith.addf %32, %34 : vector<256x128xf32>
    %cst_17 = arith.constant 0.000000e+00 : f32
    %36 = vector.broadcast %cst_17 : f32 to vector<256x128xf32>
    %37 = arith.maximumf %35, %36 : vector<256x128xf32>
    %38 = vector.shape_cast %37 : vector<256x128xf32> to vector<8x32x128xf32>
    %cst_18 = arith.constant dense<0.000000e+00> : vector<8x128xf32>
    %39 = vector.multi_reduction <add>, %38, %cst_18 [1] : vector<8x32x128xf32> to vector<8x128xf32>
    %cst_19 = arith.constant 3.200000e+01 : f32
    %40 = vector.broadcast %cst_19 : f32 to vector<8x128xf32>
    %41 = arith.divf %39, %40 : vector<8x128xf32>
    %c0_20 = arith.constant 0 : index
    %c0_21 = arith.constant 0 : index
    %42 = vector.load %arg7[%c0_20, %c0_21] : memref<8x128xf32, #tpu.memory_space<vmem>>, vector<8x128xf32>
    tpu.vector_store %arg7[%c0_20, %c0_21], %41 {strides = array<i32>} : memref<8x128xf32, #tpu.memory_space<vmem>>, vector<8x128xf32>,
    return
  }
  func.func @transform_0(%arg0: i32) -> (i32, i32, i32) {
    %c0_i32 = arith.constant 0 : i32
    %c0_i32_0 = arith.constant 0 : i32
    %c0_i32_1 = arith.constant 0 : i32
    return %arg0, %c0_i32, %c0_i32_0 : i32, i32, i32
  }
  func.func @transform_1(%arg0: i32) -> (i32, i32) {
    %c0_i32 = arith.constant 0 : i32
    %c0_i32_0 = arith.constant 0 : i32
    %c0_i32_1 = arith.constant 0 : i32
    return %c0_i32, %c0_i32_0 : i32, i32
  }
  func.func @transform_2(%arg0: i32) -> (i32, i32) {
    %c0_i32 = arith.constant 0 : i32
    %c0_i32_0 = arith.constant 0 : i32
    %c0_i32_1 = arith.constant 0 : i32
    return %c0_i32, %c0_i32_0 : i32, i32
  }
  func.func @transform_3(%arg0: i32) -> (i32, i32) {
    %c0_i32 = arith.constant 0 : i32
    %c0_i32_0 = arith.constant 0 : i32
    %c0_i32_1 = arith.constant 0 : i32
    return %c0_i32, %c0_i32_0 : i32, i32
  }
  func.func @transform_4(%arg0: i32) -> (i32, i32) {
    %c0_i32 = arith.constant 0 : i32
    %c0_i32_0 = arith.constant 0 : i32
    %c0_i32_1 = arith.constant 0 : i32
    return %c0_i32, %c0_i32_0 : i32, i32
  }
  func.func @transform_5(%arg0: i32) -> (i32, i32) {
    %c0_i32 = arith.constant 0 : i32
    %c0_i32_0 = arith.constant 0 : i32
    %c0_i32_1 = arith.constant 0 : i32
    return %c0_i32, %c0_i32_0 : i32, i32
  }
  func.func @transform_6(%arg0: i32) -> (i32, i32) {
    %c0_i32 = arith.constant 0 : i32
    %c0_i32_0 = arith.constant 0 : i32
    return %arg0, %c0_i32 : i32, i32
  }
}

</mosaic_0001>

<bundles_post_ra>
// kernel: tpu_custom_call.1
= control target key start
LH: loop header
LB: loop body
LE: loop exit
PB: predicated region body
PF: predicated region fallthrough
CT: control target
= control target key end

     0   :  { %11 = vsyncpa [#allocation3], 0  ;;  %s4130_s0 = inlined_call_operand.hbm [shape: f32[16,32,128], index: 0, kind: input, shape index: {}]   ;;  %s4131_s1 = inlined_call_operand.hbm [shape: f32[32,128], index: 1, kind: input, shape index: {}]   ;;  %s4132_s2 = inlined_call_operand.hbm [shape: bf16[128,256], index: 2, kind: input, shape index: {}]   ;;  %s4133_s3 = inlined_call_operand.vmem [shape: f32[1,256], index: 3, kind: input, shape index: {}]   ;;  %s4134_s4 = inlined_call_operand.hbm [shape: bf16[128,128], index: 4, kind: input, shape index: {}]   ;;  %s4135_s5 = inlined_call_operand.vmem [shape: f32[1,128], index: 5, kind: input, shape index: {}]   ;;  %s4136_s6 = inlined_call_operand.hbm [shape: f32[16,128], index: 6, kind: output, shape index: {}]  }
   0x1   :  { %13 = vsyncpa [#allocation3 + $0x1], 0 }
   0x2   :  { %14 = vsyncpa [#allocation6], 0 }
   0x3   :  { %15 = vsyncpa [#allocation9], 0 }
   0x4   :  { %16 = vsyncpa [#allocation4], 0 }
   0x5   :  { %18 = vsyncpa [#allocation4 + $0x1], 0  ;;  %s3253_s21 = smov 0   ;;  %s3255_s22 = smov 0  }
   0x6   :  { %s3257_s23 = smov 0   ;;  %s3259_s24 = smov 0  }
   0x7 LB: > { %s3274_s25 = sadd.s32 4294967295, %s3206_s24   ;;  %s2433_s26 = sadd.s32 4294967294, %s3206_s24   ;;  %s3206_s24 = sphi %s3259_s24, %s4159_s24   ;;  %s3202_s23 = sphi %s3257_s23, %s4158_s23   ;;  %s3198_s22 = sphi %s3255_s22, %s4157_s22   ;;  %s3194_s21 = sphi %s3253_s21, %s4156_s21  }
   0x8   : > { %p44_p0 = scmp.ne.s32.totalorder %s3198_s22, %s3194_s21  ;;  %p4137_p1 = scmp.eq.s32.totalorder %s3274_s25, 0 }
   0x9   : > { %p179_p3 = scmp.eq.s32.totalorder %s2433_s26, 1  ;;  %p2434_p5 = scmp.ge.s32.totalorder %s3206_s24, 1 }
   0xa   : > { %p3283_p4 = por %p4137_p1, %p44_p0  ;;  %p186_p7 = scmp.lt.s32.totalorder %s3206_s24, 3 }
   0xb   : > { %p3288_p6 = por %p179_p3, %p44_p0  ;;  %s3208_s30 = smov [#allocation5]  }
   0xc   : > { %s4140_s27 = scalar_select %p3283_p4, 1, 0 }
   0xd   : > { %s4141_s28 = scalar_select %p3288_p6, 1, 0 }
   0xe   : > { %p3293_p8 = pnand %p2434_p5, %p186_p7  ;;  %s198_s7 = sshll.u32 %s3208_s30, 4  ;;  %s3297_s7 = int_to_ptr.vmem [resolvable:$true] %s198_s7 }
   0xf   : > { %s3209_s9 = smov [#allocation7]   ;;  %s3210_s11 = smov [#allocation8]  }
  0x10   : > { %s4142_s29 = scalar_select %p3293_p8, 1, 0 }
  0x11   : > { %p2792_p9 = pneg %p3293_p8  ;;  %s211_s10 = sshll.u32 %s3209_s9, 4  ;;  %s3308_s10 = int_to_ptr.vmem [resolvable:$true] %s211_s10 }
  0x12   : > { %s3310_s12 = sshll.u32 %s3210_s11, 4  ;;  %s3018_s15 = scalar_lea.hbm %s4131_s1, 512  ;;  %s228_s12 = int_to_ptr.vmem [resolvable:$true] %s3310_s12 }
  0x13   : > { %p3304_p11 = pnand %p2792_p9, %p4137_p1  ;;  %p3019_p12 = scmp.ne.s32.totalorder %s4131_s1, %s3018_s15 }
  0x14   : > { %p3025_p5 = scmp.lt.u32.totalorder %s3018_s15, %s4131_s1 }
  0x15   : > { %p3320_p13 = pneg %p3304_p11 }
  0x17   : > { %p3021_p0 = pnand %p3320_p13, %p3019_p12 }
  0x19   : > { %p3022_p3 = pneg %p3021_p0 }
  0x1b   : > { %p3027_p7 = pnand %p3025_p5, %p3022_p3 }
  0x1d   : > { %3030 = shalt.err (!%p3027_p7)
}
  0x1e   : > { %s3031_s26 = scalar_lea.vmem %s3297_s7, 512  ;;  %p3039_p2 = scmp.lt.s32.totalorder %s3297_s7, %s3297_s7 }
  0x1f   : > { %p3032_p9 = scmp.ne.s32.totalorder %s3297_s7, %s3031_s26  ;;  %p3040_p6 = scmp.lt.s32.totalorder %s3031_s26, %s3031_s26 }
  0x21   : > { %p3034_p10 = pnand %p3032_p9, %p3320_p13  ;;  %p3041_p12 = por %p3040_p6, %p3039_p2 }
  0x23   : > { %p3035_p1 = pneg %p3034_p10 }
  0x25   : > { %p3042_p0 = pnand %p3041_p12, %p3035_p1 }
  0x27   : > { %3045 = shalt.err (!%p3042_p0)
}
  0x28   : > { %s3211_s30 = smov 128   ;;  %s3212_s9 = smov 8  }
  0x29   : > { %2795 = dma.hbm_to_vmem [thread:$0]  (!%p3304_p11), %s4131_s1, 512, %s3297_s7, [#allocation6], %s3211_s30, %s3211_s30, %s3212_s9  }
  0x2a   : > { %s3046_s16 = scalar_lea.hbm %s4132_s2, 2048 }
  0x2b   : > { %p3047_p1 = scmp.ne.s32.totalorder %s4132_s2, %s3046_s16  ;;  %p3053_p10 = scmp.lt.u32.totalorder %s3046_s16, %s4132_s2 }
  0x2d   : > { %p3049_p2 = pnand %p3047_p1, %p3320_p13 }
  0x2f   : > { %p3050_p6 = pneg %p3049_p2 }
  0x31   : > { %p3055_p3 = pnand %p3053_p10, %p3050_p6 }
  0x33   : > { %3058 = shalt.err (!%p3055_p3)
}
  0x34   : > { %s3059_s7 = scalar_lea.vmem %s3308_s10, 2048  ;;  %p3067_p12 = scmp.lt.s32.totalorder %s3308_s10, %s3308_s10 }
  0x35   : > { %p3060_p5 = scmp.ne.s32.totalorder %s3308_s10, %s3059_s7  ;;  %p3068_p0 = scmp.lt.s32.totalorder %s3059_s7, %s3059_s7 }
  0x37   : > { %p3062_p7 = pnand %p3060_p5, %p3320_p13  ;;  %p3069_p1 = por %p3068_p0, %p3067_p12 }
  0x39   : > { %p3063_p9 = pneg %p3062_p7 }
  0x3b   : > { %p3070_p2 = pnand %p3069_p1, %p3063_p9 }
  0x3d   : > { %3073 = shalt.err (!%p3070_p2)
}
  0x3e   : > { %2798 = dma.hbm_to_vmem [thread:$0]  (!%p3304_p11), %s4132_s2, 2048, %s3308_s10, [#allocation6], %s3211_s30, %s3211_s30, %s3212_s9  }
  0x3f   : > { %s3074_s16 = scalar_lea.hbm %s4134_s4, 1024 }
  0x40   : > { %p3075_p6 = scmp.ne.s32.totalorder %s4134_s4, %s3074_s16  ;;  %p3081_p5 = scmp.lt.u32.totalorder %s3074_s16, %s4134_s4 }
  0x42   : > { %p3077_p10 = pnand %p3075_p6, %p3320_p13 }
  0x44   : > { %p3078_p3 = pneg %p3077_p10 }
  0x46   : > { %p3083_p7 = pnand %p3081_p5, %p3078_p3 }
  0x48   : > { %3086 = shalt.err (!%p3083_p7)
}
  0x49   : > { %s3087_s7 = scalar_lea.vmem %s228_s12, 1024  ;;  %p3095_p1 = scmp.lt.s32.totalorder %s228_s12, %s228_s12 }
  0x4a   : > { %p3088_p9 = scmp.ne.s32.totalorder %s228_s12, %s3087_s7  ;;  %p3096_p2 = scmp.lt.s32.totalorder %s3087_s7, %s3087_s7 }
  0x4c   : > { %p3090_p12 = pnand %p3088_p9, %p3320_p13  ;;  %p3097_p4 = por %p3096_p2, %p3095_p1 }
  0x4e   : > { %p3091_p0 = pneg %p3090_p12 }
  0x50   : > { %p3098_p8 = pnand %p3097_p4, %p3091_p0 }
  0x52   : > { %3101 = shalt.err (!%p3098_p8)
}
  0x53   : > { %s3213_s10 = smov 64   ;;  %s3214_s18 = smov 4  }
  0x54   : > { %2801 = dma.hbm_to_vmem [thread:$0]  (!%p3304_p11), %s4134_s4, 1024, %s228_s12, [#allocation9], %s3213_s10, %s3213_s10, %s3214_s18  }
  0x55   : > { %s3390_s14 = sadd.s32 1, %s3206_s24   ;;  %s31_s16 = sadd.s32 1, %s3202_s23 }
  0x56   : > { %s28_s15 = ssub.s32 %s3206_s24, %s3390_s14  ;;  %p38_p8 = scmp.ne.s32.totalorder %s3202_s23, %s3198_s22 }
  0x57   : > { %p29_p4 = scmp.eq.s32.totalorder %s28_s15, 0  ;;  %p39_p13 = scmp.eq.s32.totalorder %s3206_s24, 0 }
  0x58   : > { %p2813_p6 = scmp.lt.s32.totalorder %s3206_s24, 2  ;;  %p4145_p3 = scmp.eq.s32.totalorder %s3274_s25, 1 }
  0x59   : > { %s3400_s17 = scalar_select %p29_p4, %s3202_s23, %s31_s16  }
  0x5a   : > { %p40_p10 = por %p39_p13, %p38_p8  ;;  %p3404_p5 = por %p4145_p3, %p38_p8 }
  0x5b   : > { %s244_s8 = sand.u32 1, %s3202_s23   ;;  %s2495_s20 = sshll.u32 %s3206_s24, 12 }
  0x5c   : > { %s2439_s12 = sshll.u32 %s244_s8, 8  ;;  %s3413_s10 = scalar_lea.hbm %s4130_s0, %s2495_s20 }
  0x5d   : > { %s248_s18 = scalar_lea.vmem [#allocation2], %s2439_s12  ;;  %p3415_p11 = pnand %p2813_p6, %p40_p10 }
  0x5e   : > { %s256_s11 = sshll.u32 %s248_s18, 4  ;;  %s3421_s15 = scalar_lea.sflag [#allocation3], %s244_s8  ;;  %s3419_s11 = int_to_ptr.vmem [resolvable:$true] %s256_s11 }
  0x5f   : > { %s3102_s16 = scalar_lea.hbm %s3413_s10, 4096  ;;  %p3104_p9 = pneg %p3415_p11 }
  0x60   : > { %p3103_p7 = scmp.ne.s32.totalorder %s3413_s10, %s3102_s16  ;;  %s3107_s26 = scalar_lea.hbm %s4130_s0, 8192 }
  0x61   : > { %p3108_p1 = scmp.lt.u32.totalorder %s3413_s10, %s4130_s0  ;;  %p3109_p2 = scmp.lt.u32.totalorder %s3107_s26, %s3102_s16 }
  0x62   : > { %p3105_p12 = pnand %p3104_p9, %p3103_p7  ;;  %p3111_p8 = scmp.lt.u32.totalorder %s3102_s16, %s3413_s10 }
  0x63   : > { %p3110_p4 = por %p3109_p2, %p3108_p1 }
  0x64   : > { %p3106_p0 = pneg %p3105_p12 }
  0x65   : > { %p3112_p13 = por %p3111_p8, %p3110_p4 }
  0x67   : > { %p3113_p6 = pnand %p3112_p13, %p3106_p0 }
  0x69   : > { %3116 = shalt.err (!%p3113_p6)
}
  0x6a   : > { %s3117_s8 = scalar_lea.vmem %s3419_s11, 4096  ;;  %s3215_s20 = smov [#allocation2]  }
  0x6b   : > { %p3118_p10 = scmp.ne.s32.totalorder %s3419_s11, %s3117_s8  ;;  %s3122_s12 = sshll.u32 %s3215_s20, 4  ;;  %s3123_s12 = int_to_ptr.vmem [resolvable:$false] %s3122_s12 }
  0x6c   : > { %s3124_s7 = scalar_lea.vmem %s3123_s12, 8192  ;;  %p3125_p12 = scmp.lt.s32.totalorder %s3419_s11, %s3123_s12 }
  0x6d   : > { %p3120_p3 = pnand %p3118_p10, %p3104_p9  ;;  %p3126_p1 = scmp.lt.s32.totalorder %s3124_s7, %s3117_s8 }
  0x6f   : > { %p3121_p7 = pneg %p3120_p3  ;;  %p3127_p2 = por %p3126_p1, %p3125_p12 }
  0x71   : > { %p3128_p4 = pnand %p3127_p2, %p3121_p7 }
  0x73   : > { %3131 = shalt.err (!%p3128_p4)
}
  0x74   : > { %2805 = dma.hbm_to_vmem [thread:$0]  (!%p3415_p11), %s3413_s10, 4096, %s3419_s11, %s3421_s15, %s3211_s30, %s3211_s30, %s3212_s9  }
  0x75   : > { %p4148_p9 = scmp.ne.s32.totalorder %s4142_s29, 0 }
  0x76   : > { %s3455_s16 = sand.u32 (!%p4148_p9), 1, %s3198_s22   ;;  %p4149_p0 = scmp.ne.s32.totalorder (!%p4148_p9), %s4140_s27, 0 }
  0x77   : > { %268 = sbr.rel (%p4148_p9) target bundleno = 1521 (0x5f1), region = 44  ;;  %s2444_s26 = sshll.u32 (!%p4148_p9), %s3455_s16, 8 }
  0x78   : > { %s271_s18 = scalar_lea.sflag (!%p4148_p9), [#allocation3], %s3455_s16  ;;  %s3459_s8 = scalar_lea.vmem (!%p4148_p9), [#allocation2], %s2444_s26 }
  0x7e   : > { %3177 = dma.done.wait (%p4149_p0), %s271_s18, 4096  }
  0x7f   : > { %3179 = vsyncadd (%p4149_p0), %s271_s18, 4294963200  ;;  %p4150_p11 = scmp.eq.s32.totalorder %s3274_s25, 0 }
  0x81   : > { %3181 = dma.done.wait (%p4150_p11), [#allocation6], 2560   ;;  %p4151_p8 = pmov %p4150_p11 }
  0x83   : > { %3183 = vsyncadd (%p4151_p8), [#allocation6], 4294964736  ;;  %p4152_p13 = pmov %p4151_p8 }
  0x84   : > { %p4153_p6 = pmov %p4151_p8 }
  0x85   : > { %3185 = dma.done.wait (%p4152_p13), [#allocation9], 1024  }
  0x86   : > { %3187 = vsyncadd (%p4153_p6), [#allocation9], 4294966272  ;;  %v3216_v0 = vmov 0   ;;  %v2858_v1 = vld [vmem:[#allocation7 + $0x4] ss:$8 sps:$4 sm:$0xff]   ;;  %v3480_v18 = vld [vmem:[#allocation5 + $0x10] sm:$0xff] }
  0x87   : > { %541 = vmatprep.mubr.bf16.mxu0 %v3216_v0  ;;  %v2860_v2 = vld [vmem:[#allocation7] ss:$8 sps:$4 sm:$0xff]   ;;  %509 = vmatprep.subr.bf16.mxu0 %v2858_v1  ;;  %v2861_v3 = vld [vmem:[#allocation7 + $0x14] ss:$8 sps:$4 sm:$0xff]   ;;  %v2863_v4 = vld [vmem:[#allocation7 + $0x10] ss:$8 sps:$4 sm:$0xff]  }
  0x88   : > { %510 = vmatpush1.bf16.msra.mxu0 %v2860_v2  ;;  %v2864_v5 = vld [vmem:[#allocation7 + $0x24] ss:$8 sps:$4 sm:$0xff]   ;;  %v2866_v6 = vld [vmem:[#allocation7 + $0x20] ss:$8 sps:$4 sm:$0xff]   ;;  %v2867_v7 = vld [vmem:[#allocation7 + $0x34] ss:$8 sps:$4 sm:$0xff]  }
  0x89   : > { %511 = vmatprep.subr.bf16.mxu0 %v2861_v3  ;;  %v2869_v8 = vld [vmem:[#allocation7 + $0x30] ss:$8 sps:$4 sm:$0xff]   ;;  %v2870_v9 = vld [vmem:[#allocation7 + $0x44] ss:$8 sps:$4 sm:$0xff]   ;;  %v2872_v10 = vld [vmem:[#allocation7 + $0x40] ss:$8 sps:$4 sm:$0xff]  }
  0x8a   : > { %v2873_v11 = vld [vmem:[#allocation7 + $0x54] ss:$8 sps:$4 sm:$0xff]   ;;  %v3474_v12 = vld [vmem:[#allocation5] sm:$0xff]  ;;  %v2875_v13 = vld [vmem:[#allocation7 + $0x50] ss:$8 sps:$4 sm:$0xff]   ;;  %vm1126_vm0 = vcmask 261120  }
  0x8b   : > { %v3476_v14 = vld [vmem:[#allocation5 + $0x8] sm:$0xff]  ;;  %v333_v15 = vld [vmem:[%s3459_s8 + $0x80] sm:$0xff]  ;;  %v335_v20 = vld [vmem:[%s3459_s8 + $0x90] sm:$0xff]  ;;  %vm2304_vm1 = vcmask 1041409   ;;  %vm2306_vm2 = vcmask 1042434   ;;  %vm2308_vm3 = vcmask 1043459  }
  0x8c   : > { %512 = vmatpush1.bf16.msra.mxu0 %v2863_v4  ;;  %v334_v16 = vld [vmem:[%s3459_s8 + $0x88] sm:$0xff]  ;;  %v369_v19 = vmul.f32 %v3474_v12, %v333_v15  ;;  %v336_v21 = vld [vmem:[%s3459_s8 + $0x98] sm:$0xff]  ;;  %v371_v24 = vmul.f32 %v3480_v18, %v335_v20  ;;  %v339_v25 = vld [vmem:[%s3459_s8 + $0xb0] sm:$0xff]  ;;  %vm2310_vm4 = vcmask 1044484   ;;  %vm2312_vm5 = vcmask 1045509   ;;  %s2448_s10 = sshll.u32 %s3455_s16, 3 }
  0x8d   : > { %513 = vmatprep.subr.bf16.mxu0 %v2864_v5  ;;  %v2876_v17 = vld [vmem:[#allocation7 + $0x64] ss:$8 sps:$4 sm:$0xff]   ;;  %v3485_v22 = vld [vmem:[#allocation5 + $0x18] sm:$0xff]  ;;  %v370_v23 = vmul.f32 %v3476_v14, %v334_v16  ;;  %v343_v31 = vld [vmem:[%s3459_s8 + $0xd0] sm:$0xff]  ;;  %v375_v37 = vmul.f32 %v3480_v18, %v339_v25  ;;  %vm2314_vm6 = vcmask 1046534   ;;  %s2491_s11 = sshll.u32 %s3274_s25, 7 }
  0x8e   : > { %v340_v26 = vld [vmem:[%s3459_s8 + $0xb8] sm:$0xff]  ;;  %v317_v27 = vld [vmem:[%s3459_s8] sm:$0xff]  ;;  %v372_v28 = vmul.f32 %v3485_v22, %v336_v21  ;;  %v342_v30 = vld [vmem:[%s3459_s8 + $0xc8] sm:$0xff]  ;;  %v379_v46 = vmul.f32 %v3480_v18, %v343_v31  ;;  %s314_s13 = scalar_lea.vmem [#allocation10], %s2448_s10  ;;  %vm2316_vm7 = vcmask 1047559   ;;  %s4086_s7 = scalar_lea.hbm %s4136_s6, %s2491_s11 }
  0x8f   : > { %v341_v29 = vld [vmem:[%s3459_s8 + $0xc0] sm:$0xff]  ;;  %v318_v33 = vld [vmem:[%s3459_s8 + $0x8] sm:$0xff]  ;;  %v3499_v36 = vpack.c.bf16 %v370_v23, %v369_v19  ;;  %v376_v38 = vmul.f32 %v3485_v22, %v340_v26  ;;  %v344_v40 = vld [vmem:[%s3459_s8 + $0xd8] sm:$0xff]  ;;  %v378_v45 = vmul.f32 %v3476_v14, %v342_v30  ;;  %v353_v57 = vmul.f32 %v3474_v12, %v317_v27  ;;  %s2334_s15 = sshll.u32 %s314_s13, 4  ;;  %s2321_s26 = scalar_lea.sflag [#allocation4], %s3455_s16  ;;  %s4088_s15 = int_to_ptr.vmem [resolvable:$true] %s2334_s15 }
  0x90   : > { %514 = vmatpush1.bf16.msra.mxu0 %v2866_v6  ;;  %v2878_v32 = vld [vmem:[#allocation7 + $0x60] ss:$8 sps:$4 sm:$0xff]   ;;  %v377_v39 = vmul.f32 %v3474_v12, %v341_v29  ;;  %v2879_v43 = vld [vmem:[#allocation7 + $0x74] ss:$8 sps:$4 sm:$0xff]   ;;  %v3507_v44 = vpack.c.bf16 %v372_v28, %v371_v24  ;;  %v380_v50 = vmul.f32 %v3485_v22, %v344_v40  ;;  %v2881_v56 = vld [vmem:[#allocation7 + $0x70] ss:$8 sps:$4 sm:$0xff]   ;;  %v354_v61 = vmul.f32 %v3476_v14, %v318_v33 }
  0x91   : > { %515 = vmatprep.subr.bf16.mxu0 %v2867_v7  ;;  %v329_v34 = vld [vmem:[%s3459_s8 + $0x60] sm:$0xff]  ;;  %v330_v35 = vld [vmem:[%s3459_s8 + $0x68] sm:$0xff]  ;;  %v347_v47 = vld [vmem:[%s3459_s8 + $0xf0] sm:$0xff]  ;;  %v3513_v49 = vpack.c.bf16 %v376_v38, %v375_v37  ;;  %s3132_s18 = scalar_lea.vmem %s4088_s15, 128  ;;  %s3217_s25 = smov [#allocation10]  }
  0x92   : > { %v345_v41 = vld [vmem:[%s3459_s8 + $0xe0] sm:$0xff]  ;;  %v346_v42 = vld [vmem:[%s3459_s8 + $0xe8] sm:$0xff]  ;;  %v348_v48 = vld [vmem:[%s3459_s8 + $0xf8] sm:$0xff]  ;;  %v3518_v53 = vpack.c.bf16 %v378_v45, %v377_v39  ;;  %v383_v54 = vmul.f32 %v3480_v18, %v347_v47  ;;  %v3524_v59 = vpack.c.bf16 %v380_v50, %v379_v46  ;;  %v365_v62 = vmul.f32 %v3474_v12, %v329_v34  ;;  %p3133_p10 = scmp.ne.s32.totalorder %s4088_s15, %s3132_s18 }
  0x93   : > { %v381_v51 = vmul.f32 %v3474_v12, %v345_v41  ;;  %v382_v52 = vmul.f32 %v3476_v14, %v346_v42  ;;  %v384_v55 = vmul.f32 %v3485_v22, %v348_v48  ;;  %v331_v58 = vld [vmem:[%s3459_s8 + $0x70] sm:$0xff]  ;;  %v366_v63 = vmul.f32 %v3476_v14, %v330_v35  ;;  %v332_v1 = vld [vmem:[%s3459_s8 + $0x78] sm:$0xff]  ;;  %v321_v21 = vld [vmem:[%s3459_s8 + $0x20] sm:$0xff] }
  0x94   : > { %516 = vmatpush1.bf16.msra.mxu0 %v2869_v8  ;;  %v3534_v3 = vpack.c.bf16 %v354_v61, %v353_v57  ;;  %v319_v4 = vld [vmem:[%s3459_s8 + $0x10] sm:$0xff]  ;;  %v367_v6 = vmul.f32 %v3480_v18, %v331_v58  ;;  %v368_v7 = vmul.f32 %v3485_v22, %v332_v1  ;;  %v320_v8 = vld [vmem:[%s3459_s8 + $0x18] sm:$0xff]  ;;  %v322_v23 = vld [vmem:[%s3459_s8 + $0x28] sm:$0xff]  ;;  %v357_v24 = vmul.f32 %v3474_v12, %v321_v21  ;;  %p3134_p3 = pnand %p3133_p10, %p3404_p5 }
  0x95   : > { %517 = vmatprep.subr.bf16.mxu0 %v2870_v9  ;;  %v3526_v60 = vpack.c.bf16 %v382_v52, %v381_v51  ;;  %v3532_v2 = vpack.c.bf16 %v384_v55, %v383_v54  ;;  %v391_v5 = vpack.c.bf16 %v366_v63, %v365_v62  ;;  %v337_v9 = vld [vmem:[%s3459_s8 + $0xa0] sm:$0xff]  ;;  %v358_v25 = vmul.f32 %v3476_v14, %v322_v23  ;;  %v323_v27 = vld [vmem:[%s3459_s8 + $0x30] sm:$0xff]  ;;  %v324_v28 = vld [vmem:[%s3459_s8 + $0x38] sm:$0xff] }
  0x96   : > { %v392_v15 = vpack.c.bf16 %v368_v7, %v367_v6  ;;  %v373_v16 = vmul.f32 %v3474_v12, %v337_v9  ;;  %v359_v29 = vmul.f32 %v3480_v18, %v323_v27  ;;  %v360_v30 = vmul.f32 %v3485_v22, %v324_v28  ;;  %v326_v33 = vld [vmem:[%s3459_s8 + $0x48] sm:$0xff]  ;;  %v327_v38 = vld [vmem:[%s3459_s8 + $0x50] sm:$0xff]  ;;  %v328_v39 = vld [vmem:[%s3459_s8 + $0x58] sm:$0xff]  ;;  %p3135_p7 = pneg %p3134_p3 }
  0x97   : > { %v3559_v26 = vpack.c.bf16 %v358_v25, %v357_v24  ;;  %v362_v35 = vmul.f32 %v3476_v14, %v326_v33  ;;  %v363_v40 = vmul.f32 %v3480_v18, %v327_v38  ;;  %v364_v41 = vmul.f32 %v3485_v22, %v328_v39 }
  0x98   : > { %518 = vmatpush1.bf16.msra.mxu0 %v2872_v10  ;;  %v338_v10 = vld [vmem:[%s3459_s8 + $0xa8] sm:$0xff]  ;;  %v3567_v31 = vpack.c.bf16 %v360_v30, %v359_v29 }
  0x99   : > { %519 = vmatprep.subr.bf16.mxu0 %v2873_v11  ;;  %v355_v11 = vmul.f32 %v3480_v18, %v319_v4  ;;  %v3583_v42 = vpack.c.bf16 %v364_v41, %v363_v40 }
  0x9c   : > { %520 = vmatpush1.bf16.msra.mxu0 %v2875_v13  ;;  %v356_v13 = vmul.f32 %v3485_v22, %v320_v8  ;;  %v417_v22 = vld [vmem:[%s4133_s3] sm:$0x3] }
  0x9d   : > { %521 = vmatprep.subr.bf16.mxu0 %v2876_v17  ;;  %v374_v17 = vmul.f32 %v3476_v14, %v338_v10 }
  0x9e   : > { %v3548_v19 = vpack.c.bf16 %v356_v13, %v355_v11 }
  0x9f   : > { %v3550_v20 = vpack.c.bf16 %v374_v17, %v373_v16 }
  0xa0   : > { %522 = vmatpush1.bf16.msra.mxu0 %v2878_v32  ;;  %v325_v32 = vld [vmem:[%s3459_s8 + $0x40] sm:$0xff]  ;;  %s3136_s8 = sshll.u32 %s3217_s25, 4  ;;  %s3137_s8 = int_to_ptr.vmem [resolvable:$false] %s3136_s8 }
  0xa1   : > { %523 = vmatprep.subr.bf16.mxu0 %v2879_v43  ;;  %v361_v34 = vmul.f32 %v3474_v12, %v325_v32  ;;  %v419_v12 = vlaneseq  ;;  %s3138_s27 = scalar_lea.vmem %s3137_s8, 256  ;;  %p3139_p12 = scmp.lt.s32.totalorder %s4088_s15, %s3137_s8 }
  0xa2   : > { %p3140_p1 = scmp.lt.s32.totalorder %s3138_s27, %s3132_s18 }
  0xa3   : > { %v3575_v37 = vpack.c.bf16 %v362_v35, %v361_v34  ;;  %v420_v14 = vshrl.u32 %v419_v12, 7 }
  0xa4   : > { %524 = vmatpush1.bf16.msra.mxu0 %v2881_v56  ;;  %p3141_p2 = por %p3140_p1, %p3139_p12 }
  0xa5   : > { %2672 = vmatprep.subr.bf16.mxu0 %v391_v5  ;;  %v421_v18 = vsub.s32 0, %v420_v14  ;;  %v425_v43 = vsub.s32 1, %v420_v14 }
  0xa6   : > { %p3142_p4 = pnand %p3141_p2, %p3135_p7 }
  0xa7   : > { %542 = vmatmul.mubr.bf16.vlgmr.msra.gmra.mrb[0].mxu0 %v3534_v3  ;;  %v3607_v45 = vrot.slane %v417_v22, %v421_v18  ;;  %v3609_v47 = vrot.slane %v417_v22, %v425_v43 }
  0xa8   : > { %551 = vmatprep.mubr.bf16.mxu0 %v3216_v0  ;;  %2673 = vmatpush3.bf16.msra.mxu0 %v391_v5 }
  0xa9   : > { %2674 = vmatprep.subr.bf16.mxu0 %v392_v15 }
  0xac   : > { %2675 = vmatpush3.bf16.msra.mxu0 %v392_v15 }
  0xad   : > { %2688 = vmatprep.subr.bf16.mxu0 %v3550_v20 }
  0xaf   : > { %552 = vmatmul.mubr.bf16.gmra.mrb[4].mxu0 %v3548_v19 }
  0xb0   : > { %561 = vmatprep.mubr.bf16.mxu0 %v3216_v0 }
  0xb7   : > { %562 = vmatmul.mubr.bf16.gmra.mrb[8].mxu0 %v3559_v26 }
  0xb8   : > { %571 = vmatprep.mubr.bf16.mxu0 %v3216_v0 }
  0xbf   : > { %572 = vmatmul.mubr.bf16.gmra.mrb[12].mxu0 %v3567_v31 }
  0xc0   : > { %581 = vmatprep.mubr.bf16.mxu0 %v3216_v0 }
  0xc7   : > { %582 = vmatmul.mubr.bf16.gmra.mrb[16].mxu0 %v3575_v37 }
  0xc8   : > { %591 = vmatprep.mubr.bf16.mxu0 %v3216_v0 }
  0xcf   : > { %592 = vmatmul.mubr.bf16.gmra.mrb[20].mxu0 %v3583_v42 }
  0xd0   : > { %601 = vmatprep.mubr.bf16.mxu0 %v3216_v0 }
  0xd7   : > { %602 = vmatmul.mubr.bf16.gmra.mrb[24].mxu0 %v391_v5 }
  0xd8   : > { %611 = vmatprep.mubr.bf16.mxu0 %v3216_v0 }
  0xdf   : > { %612 = vmatmul.mubr.bf16.gmra.mrb[28].mxu0 %v392_v15 }
  0xe0   : > { %621 = vmatprep.mubr.bf16.mxu0 %v3216_v0 }
  0xe7   : > { %622 = vmatmul.mubr.bf16.gmra.mrb[32].mxu0 %v3499_v36 }
  0xe8   : > { %631 = vmatprep.mubr.bf16.mxu0 %v3216_v0 }
  0xef   : > { %632 = vmatmul.mubr.bf16.gmra.mrb[36].mxu0 %v3507_v44 }
  0xf0   : > { %641 = vmatprep.mubr.bf16.mxu0 %v3216_v0 }
  0xf7   : > { %642 = vmatmul.mubr.bf16.gmra.mrb[40].mxu0 %v3550_v20 }
  0xf8   : > { %651 = vmatprep.mubr.bf16.mxu0 %v3216_v0 }
  0xff   : > { %652 = vmatmul.mubr.bf16.gmra.mrb[44].mxu0 %v3513_v49 }
 0x100   : > { %661 = vmatprep.mubr.bf16.mxu0 %v3216_v0 }
 0x107   : > { %662 = vmatmul.mubr.bf16.gmra.mrb[48].mxu0 %v3518_v53 }
 0x108   : > { %671 = vmatprep.mubr.bf16.mxu0 %v3216_v0 }
 0x10f   : > { %672 = vmatmul.mubr.bf16.gmra.mrb[52].mxu0 %v3524_v59 }
 0x110   : > { %681 = vmatprep.mubr.bf16.mxu0 %v3216_v0 }
 0x117   : > { %682 = vmatmul.mubr.bf16.gmra.mrb[56].mxu0 %v3526_v60 }
 0x118   : > { %691 = vmatprep.mubr.bf16.mxu0 %v3216_v0 }
 0x11f   : > { %692 = vmatmul.mubr.bf16.gmra.mrb[60].mxu0 %v3532_v2 }
 0x17a   : > { %v543_v46 = vpop.f32.mrb[0].mxu0 }
 0x17b   : > { %v545_v48 = vpop.f32.mrb[1].mxu0  ;;  %v544_v51 = vadd.f32 %v543_v46, %v3607_v45 }
 0x17c   : > { %v547_v50 = vpop.f32.mrb[2].mxu0  ;;  %v546_v54 = vadd.f32 %v545_v48, %v3609_v47 }
 0x17d   : > { %v548_v0 = vadd.f32 %v547_v50, %v3607_v45  ;;  %v549_v52 = vpop.f32.mrb[3].mxu0 }
 0x17e   : > { %v550_v55 = vadd.f32 %v549_v52, %v3609_v47 }
 0x17f   : > { %v702_v56 = vpack.c.bf16 %v548_v0, %v544_v51 }
 0x180   : > { %v718_v57 = vpack.c.bf16 %v550_v55, %v546_v54 }
 0x181   : > { %2588 = vmatprep.mubr.bf16.mxu1 %v702_v56 }
 0x182   : > { %v553_v58 = vpop.f32.mrb[4].mxu0  ;;  %2584 = vmatprep.subr.bf16.mxu1 %v718_v57 }
 0x183   : > { %v555_v61 = vpop.f32.mrb[5].mxu0  ;;  %2585 = vmatpush3.bf16.xpose.msra.mxu1 %v718_v57  ;;  %v554_v63 = vadd.f32 %v553_v58, %v3607_v45 }
 0x184   : > { %v557_v62 = vpop.f32.mrb[6].mxu0  ;;  %v556_v5 = vadd.f32 %v555_v61, %v3609_v47 }
 0x185   : > { %v558_v1 = vadd.f32 %v557_v62, %v3607_v45  ;;  %v559_v4 = vpop.f32.mrb[7].mxu0 }
 0x186   : > { %v560_v6 = vadd.f32 %v559_v4, %v3609_v47 }
 0x187   : > { %v703_v7 = vpack.c.bf16 %v558_v1, %v554_v63 }
 0x188   : > { %v719_v8 = vpack.c.bf16 %v560_v6, %v556_v5 }
 0x18a   : > { %v563_v9 = vpop.f32.mrb[8].mxu0  ;;  %2586 = vmatprep.subr.bf16.mxu1 %v719_v8 }
 0x18b   : > { %v565_v10 = vpop.f32.mrb[9].mxu0  ;;  %2587 = vmatpush3.bf16.xpose.msra.mxu1 %v719_v8  ;;  %v564_v13 = vadd.f32 %v563_v9, %v3607_v45 }
 0x18c   : > { %v567_v11 = vpop.f32.mrb[10].mxu0  ;;  %v566_v17 = vadd.f32 %v565_v10, %v3609_v47 }
 0x18d   : > { %v568_v15 = vadd.f32 %v567_v11, %v3607_v45  ;;  %v569_v16 = vpop.f32.mrb[11].mxu0 }
 0x18e   : > { %v570_v21 = vadd.f32 %v569_v16, %v3609_v47 }
 0x18f   : > { %v704_v23 = vpack.c.bf16 %v568_v15, %v564_v13 }
 0x190   : > { %v720_v24 = vpack.c.bf16 %v570_v21, %v566_v17 }
 0x192   : > { %v573_v25 = vpop.f32.mrb[12].mxu0  ;;  %2589 = vmatmul.mubr.bf16.vlgmr.msra.gmra.mrb[0].mxu1 %v703_v7  ;;  %2592 = vmatprep.subr.bf16.mxu1 %v720_v24 }
 0x193   : > { %v575_v27 = vpop.f32.mrb[13].mxu0  ;;  %2593 = vmatpush3.bf16.xpose.msra.mxu1 %v720_v24  ;;  %2596 = vmatprep.mubr.bf16.mxu1 %v704_v23  ;;  %v574_v29 = vadd.f32 %v573_v25, %v3607_v45 }
 0x194   : > { %v577_v28 = vpop.f32.mrb[14].mxu0  ;;  %v576_v33 = vadd.f32 %v575_v27, %v3609_v47 }
 0x195   : > { %v578_v30 = vadd.f32 %v577_v28, %v3607_v45  ;;  %v579_v32 = vpop.f32.mrb[15].mxu0 }
 0x196   : > { %v580_v34 = vadd.f32 %v579_v32, %v3609_v47 }
 0x197   : > { %v705_v35 = vpack.c.bf16 %v578_v30, %v574_v29 }
 0x198   : > { %v721_v38 = vpack.c.bf16 %v580_v34, %v576_v33 }
 0x19a   : > { %v583_v39 = vpop.f32.mrb[16].mxu0  ;;  %2594 = vmatprep.subr.bf16.mxu1 %v721_v38 }
 0x19b   : > { %v585_v40 = vpop.f32.mrb[17].mxu0  ;;  %2595 = vmatpush3.bf16.xpose.msra.mxu1 %v721_v38  ;;  %v584_v12 = vadd.f32 %v583_v39, %v3607_v45 }
 0x19c   : > { %v587_v41 = vpop.f32.mrb[18].mxu0  ;;  %v586_v22 = vadd.f32 %v585_v40, %v3609_v47 }
 0x19d   : > { %v588_v14 = vadd.f32 %v587_v41, %v3607_v45  ;;  %v589_v18 = vpop.f32.mrb[19].mxu0 }
 0x19e   : > { %v590_v43 = vadd.f32 %v589_v18, %v3609_v47 }
 0x19f   : > { %v706_v46 = vpack.c.bf16 %v588_v14, %v584_v12 }
 0x1a0   : > { %v722_v48 = vpack.c.bf16 %v590_v43, %v586_v22 }
 0x1a2   : > { %v593_v50 = vpop.f32.mrb[20].mxu0  ;;  %2597 = vmatmul.mubr.bf16.vlgmr.msra.gmra.mrb[4].mxu1 %v705_v35  ;;  %2600 = vmatprep.subr.bf16.mxu1 %v722_v48 }
 0x1a3   : > { %v595_v51 = vpop.f32.mrb[21].mxu0  ;;  %2601 = vmatpush3.bf16.xpose.msra.mxu1 %v722_v48  ;;  %2604 = vmatprep.mubr.bf16.mxu1 %v706_v46  ;;  %v594_v52 = vadd.f32 %v593_v50, %v3607_v45 }
 0x1a4   : > { %v597_v0 = vpop.f32.mrb[22].mxu0  ;;  %v596_v56 = vadd.f32 %v595_v51, %v3609_v47 }
 0x1a5   : > { %v598_v54 = vadd.f32 %v597_v0, %v3607_v45  ;;  %v599_v55 = vpop.f32.mrb[23].mxu0 }
 0x1a6   : > { %v600_v57 = vadd.f32 %v599_v55, %v3609_v47 }
 0x1a7   : > { %v707_v58 = vpack.c.bf16 %v598_v54, %v594_v52 }
 0x1a8   : > { %v723_v61 = vpack.c.bf16 %v600_v57, %v596_v56 }
 0x1aa   : > { %v603_v62 = vpop.f32.mrb[24].mxu0  ;;  %2602 = vmatprep.subr.bf16.mxu1 %v723_v61 }
 0x1ab   : > { %v605_v63 = vpop.f32.mrb[25].mxu0  ;;  %2603 = vmatpush3.bf16.xpose.msra.mxu1 %v723_v61  ;;  %v604_v4 = vadd.f32 %v603_v62, %v3607_v45 }
 0x1ac   : > { %v607_v1 = vpop.f32.mrb[26].mxu0  ;;  %v606_v7 = vadd.f32 %v605_v63, %v3609_v47 }
 0x1ad   : > { %v608_v5 = vadd.f32 %v607_v1, %v3607_v45  ;;  %v609_v6 = vpop.f32.mrb[27].mxu0 }
 0x1ae   : > { %v610_v8 = vadd.f32 %v609_v6, %v3609_v47 }
 0x1af   : > { %v708_v9 = vpack.c.bf16 %v608_v5, %v604_v4 }
 0x1b0   : > { %v724_v10 = vpack.c.bf16 %v610_v8, %v606_v7 }
 0x1b2   : > { %v613_v11 = vpop.f32.mrb[28].mxu0  ;;  %2605 = vmatmul.mubr.bf16.vlgmr.msra.gmra.mrb[8].mxu1 %v707_v58  ;;  %2608 = vmatprep.subr.bf16.mxu1 %v724_v10 }
 0x1b3   : > { %v615_v13 = vpop.f32.mrb[29].mxu0  ;;  %2609 = vmatpush3.bf16.xpose.msra.mxu1 %v724_v10  ;;  %2612 = vmatprep.mubr.bf16.mxu1 %v708_v9  ;;  %v614_v16 = vadd.f32 %v613_v11, %v3607_v45 }
 0x1b4   : > { %v617_v15 = vpop.f32.mrb[30].mxu0  ;;  %v616_v23 = vadd.f32 %v615_v13, %v3609_v47 }
 0x1b5   : > { %v618_v17 = vadd.f32 %v617_v15, %v3607_v45  ;;  %v619_v21 = vpop.f32.mrb[31].mxu0 }
 0x1b6   : > { %v620_v24 = vadd.f32 %v619_v21, %v3609_v47 }
 0x1b7   : > { %v709_v25 = vpack.c.bf16 %v618_v17, %v614_v16 }
 0x1b8   : > { %v725_v27 = vpack.c.bf16 %v620_v24, %v616_v23 }
 0x1ba   : > { %v623_v28 = vpop.f32.mrb[32].mxu0  ;;  %2610 = vmatprep.subr.bf16.mxu1 %v725_v27 }
 0x1bb   : > { %v625_v29 = vpop.f32.mrb[33].mxu0  ;;  %2611 = vmatpush3.bf16.xpose.msra.mxu1 %v725_v27  ;;  %v624_v32 = vadd.f32 %v623_v28, %v3607_v45 }
 0x1bc   : > { %v627_v30 = vpop.f32.mrb[34].mxu0  ;;  %v626_v35 = vadd.f32 %v625_v29, %v3609_v47 }
 0x1bd   : > { %v628_v33 = vadd.f32 %v627_v30, %v3607_v45  ;;  %v629_v34 = vpop.f32.mrb[35].mxu0 }
 0x1be   : > { %v630_v38 = vadd.f32 %v629_v34, %v3609_v47 }
 0x1bf   : > { %v710_v39 = vpack.c.bf16 %v628_v33, %v624_v32 }
 0x1c0   : > { %v726_v40 = vpack.c.bf16 %v630_v38, %v626_v35 }
 0x1c2   : > { %v633_v41 = vpop.f32.mrb[36].mxu0  ;;  %2613 = vmatmul.mubr.bf16.vlgmr.msra.gmra.mrb[12].mxu1 %v709_v25  ;;  %2616 = vmatprep.subr.bf16.mxu1 %v726_v40 }
 0x1c3   : > { %v635_v12 = vpop.f32.mrb[37].mxu0  ;;  %2617 = vmatpush3.bf16.xpose.msra.mxu1 %v726_v40  ;;  %2620 = vmatprep.mubr.bf16.mxu1 %v710_v39  ;;  %v634_v18 = vadd.f32 %v633_v41, %v3607_v45 }
 0x1c4   : > { %v637_v14 = vpop.f32.mrb[38].mxu0  ;;  %v636_v46 = vadd.f32 %v635_v12, %v3609_v47 }
 0x1c5   : > { %v638_v22 = vadd.f32 %v637_v14, %v3607_v45  ;;  %v639_v43 = vpop.f32.mrb[39].mxu0 }
 0x1c6   : > { %v640_v48 = vadd.f32 %v639_v43, %v3609_v47 }
 0x1c7   : > { %v711_v50 = vpack.c.bf16 %v638_v22, %v634_v18 }
 0x1c8   : > { %v727_v51 = vpack.c.bf16 %v640_v48, %v636_v46 }
 0x1ca   : > { %v643_v0 = vpop.f32.mrb[40].mxu0  ;;  %2618 = vmatprep.subr.bf16.mxu1 %v727_v51 }
 0x1cb   : > { %v645_v52 = vpop.f32.mrb[41].mxu0  ;;  %2619 = vmatpush3.bf16.xpose.msra.mxu1 %v727_v51  ;;  %v644_v55 = vadd.f32 %v643_v0, %v3607_v45 }
 0x1cc   : > { %v647_v54 = vpop.f32.mrb[42].mxu0  ;;  %v646_v58 = vadd.f32 %v645_v52, %v3609_v47 }
 0x1cd   : > { %v648_v56 = vadd.f32 %v647_v54, %v3607_v45  ;;  %v649_v57 = vpop.f32.mrb[43].mxu0 }
 0x1ce   : > { %v650_v61 = vadd.f32 %v649_v57, %v3609_v47 }
 0x1cf   : > { %v712_v62 = vpack.c.bf16 %v648_v56, %v644_v55 }
 0x1d0   : > { %v728_v63 = vpack.c.bf16 %v650_v61, %v646_v58 }
 0x1d2   : > { %v653_v1 = vpop.f32.mrb[44].mxu0  ;;  %2621 = vmatmul.mubr.bf16.vlgmr.msra.gmra.mrb[16].mxu1 %v711_v50  ;;  %2624 = vmatprep.subr.bf16.mxu1 %v728_v63 }
 0x1d3   : > { %v655_v4 = vpop.f32.mrb[45].mxu0  ;;  %2625 = vmatpush3.bf16.xpose.msra.mxu1 %v728_v63  ;;  %2628 = vmatprep.mubr.bf16.mxu1 %v712_v62  ;;  %v654_v6 = vadd.f32 %v653_v1, %v3607_v45 }
 0x1d4   : > { %v657_v5 = vpop.f32.mrb[46].mxu0  ;;  %v656_v9 = vadd.f32 %v655_v4, %v3609_v47 }
 0x1d5   : > { %v658_v7 = vadd.f32 %v657_v5, %v3607_v45  ;;  %v659_v8 = vpop.f32.mrb[47].mxu0 }
 0x1d6   : > { %v660_v10 = vadd.f32 %v659_v8, %v3609_v47 }
 0x1d7   : > { %v713_v11 = vpack.c.bf16 %v658_v7, %v654_v6 }
 0x1d8   : > { %v729_v13 = vpack.c.bf16 %v660_v10, %v656_v9 }
 0x1da   : > { %v663_v15 = vpop.f32.mrb[48].mxu0  ;;  %2626 = vmatprep.subr.bf16.mxu1 %v729_v13 }
 0x1db   : > { %v665_v16 = vpop.f32.mrb[49].mxu0  ;;  %2627 = vmatpush3.bf16.xpose.msra.mxu1 %v729_v13  ;;  %v664_v21 = vadd.f32 %v663_v15, %v3607_v45 }
 0x1dc   : > { %v667_v17 = vpop.f32.mrb[50].mxu0  ;;  %v666_v25 = vadd.f32 %v665_v16, %v3609_v47 }
 0x1dd   : > { %v668_v23 = vadd.f32 %v667_v17, %v3607_v45  ;;  %v669_v24 = vpop.f32.mrb[51].mxu0 }
 0x1de   : > { %v670_v27 = vadd.f32 %v669_v24, %v3609_v47 }
 0x1df   : > { %v714_v28 = vpack.c.bf16 %v668_v23, %v664_v21 }
 0x1e0   : > { %v730_v29 = vpack.c.bf16 %v670_v27, %v666_v25 }
 0x1e2   : > { %v673_v30 = vpop.f32.mrb[52].mxu0  ;;  %2629 = vmatmul.mubr.bf16.vlgmr.msra.gmra.mrb[20].mxu1 %v713_v11  ;;  %2632 = vmatprep.subr.bf16.mxu1 %v730_v29 }
 0x1e3   : > { %v675_v32 = vpop.f32.mrb[53].mxu0  ;;  %2633 = vmatpush3.bf16.xpose.msra.mxu1 %v730_v29  ;;  %2636 = vmatprep.mubr.bf16.mxu1 %v714_v28  ;;  %v674_v34 = vadd.f32 %v673_v30, %v3607_v45 }
 0x1e4   : > { %v677_v33 = vpop.f32.mrb[54].mxu0  ;;  %v676_v39 = vadd.f32 %v675_v32, %v3609_v47 }
 0x1e5   : > { %v678_v35 = vadd.f32 %v677_v33, %v3607_v45  ;;  %v679_v38 = vpop.f32.mrb[55].mxu0 }
 0x1e6   : > { %v680_v40 = vadd.f32 %v679_v38, %v3609_v47 }
 0x1e7   : > { %v715_v41 = vpack.c.bf16 %v678_v35, %v674_v34 }
 0x1e8   : > { %v731_v12 = vpack.c.bf16 %v680_v40, %v676_v39 }
 0x1ea   : > { %v683_v14 = vpop.f32.mrb[56].mxu0  ;;  %2634 = vmatprep.subr.bf16.mxu1 %v731_v12 }
 0x1eb   : > { %v685_v18 = vpop.f32.mrb[57].mxu0  ;;  %2635 = vmatpush3.bf16.xpose.msra.mxu1 %v731_v12  ;;  %v684_v43 = vadd.f32 %v683_v14, %v3607_v45 }
 0x1ec   : > { %v687_v22 = vpop.f32.mrb[58].mxu0  ;;  %v686_v50 = vadd.f32 %v685_v18, %v3609_v47 }
 0x1ed   : > { %v688_v46 = vadd.f32 %v687_v22, %v3607_v45  ;;  %v689_v48 = vpop.f32.mrb[59].mxu0 }
 0x1ee   : > { %v690_v51 = vadd.f32 %v689_v48, %v3609_v47 }
 0x1ef   : > { %v716_v0 = vpack.c.bf16 %v688_v46, %v684_v43 }
 0x1f0   : > { %v732_v52 = vpack.c.bf16 %v690_v51, %v686_v50 }
 0x1f2   : > { %v693_v54 = vpop.f32.mrb[60].mxu0  ;;  %2637 = vmatmul.mubr.bf16.vlgmr.msra.gmra.mrb[24].mxu1 %v715_v41  ;;  %2640 = vmatprep.subr.bf16.mxu1 %v732_v52 }
 0x1f3   : > { %v695_v55 = vpop.f32.mrb[61].mxu0  ;;  %2641 = vmatpush3.bf16.xpose.msra.mxu1 %v732_v52  ;;  %2644 = vmatprep.mubr.bf16.mxu1 %v716_v0  ;;  %v694_v57 = vadd.f32 %v693_v54, %v3607_v45 }
 0x1f4   : > { %v697_v56 = vpop.f32.mrb[62].mxu0  ;;  %v696_v62 = vadd.f32 %v695_v55, %v3609_v47 }
 0x1f5   : > { %v698_v58 = vadd.f32 %v697_v56, %v3607_v45  ;;  %v699_v61 = vpop.f32.mrb[63].mxu0 }
 0x1f6   : > { %v700_v63 = vadd.f32 %v699_v61, %v3609_v47 }
 0x1f7   : > { %v717_v1 = vpack.c.bf16 %v698_v58, %v694_v57 }
 0x1f8   : > { %v733_v4 = vpack.c.bf16 %v700_v63, %v696_v62 }
 0x1fa   : > { %2642 = vmatprep.subr.bf16.mxu1 %v733_v4 }
 0x1fb   : > { %2643 = vmatpush3.bf16.xpose.msra.mxu1 %v733_v4 }
 0x1fc   : > { %2648 = vmatprep.subr.bf16.mxu1 %v3534_v3 }
 0x202   : > { %2645 = vmatmul.mubr.bf16.vlgmr.msra.gmra.mrb[28].mxu1 %v717_v1 }
 0x203   : > { %2649 = vmatpush3.bf16.msra.mxu1 %v3534_v3 }
 0x204   : > { %2650 = vmatprep.subr.bf16.mxu1 %v3548_v19 }
 0x207   : > { %2651 = vmatpush3.bf16.msra.mxu1 %v3548_v19 }
 0x208   : > { %2656 = vmatprep.subr.bf16.mxu1 %v3559_v26 }
 0x265   : > { %v3680_v45 = vpop.f32.mrb[0].mxu1 }
 0x266   : > { %v3682_v5 = vpop.f32.mrb[1].mxu1  ;;  %v1133_v47 = vsel %vm1126_vm0, %v3680_v45, -inf }
 0x267   : > { %1134 = vmax.xlane.f32.xlu1 %v1133_v47  ;;  %v3686_v6 = vpop.f32.mrb[2].mxu1  ;;  %v1127_v3 = vsel %vm1126_vm0, %v3682_v5, -inf }
 0x268   : > { %1128 = vmax.xlane.f32.xlu0 %v1127_v3  ;;  %v3690_v7 = vpop.f32.mrb[3].mxu1  ;;  %v1136_v19 = vsel %vm1126_vm0, %v3686_v6, -inf }
 0x269   : > { %v1130_v8 = vsel %vm1126_vm0, %v3690_v7, -inf }
 0x26b   : > { %1137 = vmax.xlane.f32.xlu1 %v1136_v19 }
 0x26c   : > { %1131 = vmax.xlane.f32.xlu0 %v1130_v8 }
 0x275   : > { %v3696_v9 = vpop.f32.mrb[4].mxu1 }
 0x276   : > { %v3698_v10 = vpop.f32.mrb[5].mxu1  ;;  %v1145_v11 = vsel %vm1126_vm0, %v3696_v9, -inf }
 0x277   : > { %1146 = vmax.xlane.f32.xlu0 %v1145_v11  ;;  %v3702_v13 = vpop.f32.mrb[6].mxu1  ;;  %v1139_v17 = vsel %vm1126_vm0, %v3698_v10, -inf }
 0x278   : > { %v3704_v15 = vpop.f32.mrb[7].mxu1  ;;  %v1148_v16 = vsel %vm1126_vm0, %v3702_v13, -inf }
 0x279   : > { %1149 = vmax.xlane.f32.xlu1 %v1148_v16  ;;  %v1142_v21 = vsel %vm1126_vm0, %v3704_v15, -inf }
 0x27b   : > { %1140 = vmax.xlane.f32.xlu0 %v1139_v17 }
 0x27d   : > { %1143 = vmax.xlane.f32.xlu1 %v1142_v21 }
 0x285   : > { %v3712_v23 = vpop.f32.mrb[8].mxu1 }
 0x286   : > { %v3714_v24 = vpop.f32.mrb[9].mxu1  ;;  %v1157_v25 = vsel %vm1126_vm0, %v3712_v23, -inf }
 0x287   : > { %1158 = vmax.xlane.f32.xlu0 %v1157_v25  ;;  %v3718_v27 = vpop.f32.mrb[10].mxu1  ;;  %v1151_v30 = vsel %vm1126_vm0, %v3714_v24, -inf }
 0x288   : > { %v3720_v28 = vpop.f32.mrb[11].mxu1  ;;  %v1160_v29 = vsel %vm1126_vm0, %v3718_v27, -inf }
 0x289   : > { %1161 = vmax.xlane.f32.xlu1 %v1160_v29  ;;  %v1154_v32 = vsel %vm1126_vm0, %v3720_v28, -inf }
 0x28b   : > { %1152 = vmax.xlane.f32.xlu0 %v1151_v30 }
 0x28d   : > { %1155 = vmax.xlane.f32.xlu1 %v1154_v32 }
 0x295   : > { %v3728_v33 = vpop.f32.mrb[12].mxu1 }
 0x296   : > { %v3730_v34 = vpop.f32.mrb[13].mxu1  ;;  %v1169_v41 = vsel %vm1126_vm0, %v3728_v33, -inf }
 0x297   : > { %v3732_v35 = vpop.f32.mrb[14].mxu1  ;;  %v1163_v38 = vsel %vm1126_vm0, %v3730_v34, -inf }
 0x298   : > { %1164 = vmax.xlane.f32.xlu0 %v1163_v38  ;;  %v3736_v39 = vpop.f32.mrb[15].mxu1  ;;  %v1172_v12 = vsel %vm1126_vm0, %v3732_v35, -inf }
 0x299   : > { %v1166_v40 = vsel %vm1126_vm0, %v3736_v39, -inf }
 0x29a   : > { %1167 = vmax.xlane.f32.xlu1 %v1166_v40 }
 0x29c   : > { %1170 = vmax.xlane.f32.xlu0 %v1169_v41 }
 0x29e   : > { %1173 = vmax.xlane.f32.xlu1 %v1172_v12 }
 0x2a5   : > { %v3744_v14 = vpop.f32.mrb[16].mxu1 }
 0x2a6   : > { %v3746_v18 = vpop.f32.mrb[17].mxu1  ;;  %v1181_v50 = vsel %vm1126_vm0, %v3744_v14, -inf }
 0x2a7   : > { %v3748_v22 = vpop.f32.mrb[18].mxu1  ;;  %v1175_v43 = vsel %vm1126_vm0, %v3746_v18, -inf }
 0x2a8   : > { %1176 = vmax.xlane.f32.xlu0 %v1175_v43  ;;  %v3752_v46 = vpop.f32.mrb[19].mxu1  ;;  %v1184_v51 = vsel %vm1126_vm0, %v3748_v22, -inf }
 0x2a9   : > { %v1178_v48 = vsel %vm1126_vm0, %v3752_v46, -inf }
 0x2aa   : > { %1179 = vmax.xlane.f32.xlu1 %v1178_v48 }
 0x2ac   : > { %1182 = vmax.xlane.f32.xlu0 %v1181_v50 }
 0x2ae   : > { %1185 = vmax.xlane.f32.xlu1 %v1184_v51 }
 0x2b5   : > { %v3760_v0 = vpop.f32.mrb[20].mxu1 }
 0x2b6   : > { %v3762_v52 = vpop.f32.mrb[21].mxu1  ;;  %v1193_v58 = vsel %vm1126_vm0, %v3760_v0, -inf }
 0x2b7   : > { %v3764_v54 = vpop.f32.mrb[22].mxu1  ;;  %v1187_v55 = vsel %vm1126_vm0, %v3762_v52, -inf }
 0x2b8   : > { %1188 = vmax.xlane.f32.xlu0 %v1187_v55  ;;  %v3768_v56 = vpop.f32.mrb[23].mxu1  ;;  %v1196_v61 = vsel %vm1126_vm0, %v3764_v54, -inf }
 0x2b9   : > { %v1190_v57 = vsel %vm1126_vm0, %v3768_v56, -inf }
 0x2ba   : > { %1191 = vmax.xlane.f32.xlu1 %v1190_v57 }
 0x2bc   : > { %1194 = vmax.xlane.f32.xlu0 %v1193_v58 }
 0x2be   : > { %1197 = vmax.xlane.f32.xlu1 %v1196_v61 }
 0x2c5   : > { %v3776_v62 = vpop.f32.mrb[24].mxu1 }
 0x2c6   : > { %v3778_v63 = vpop.f32.mrb[25].mxu1  ;;  %v1205_v19 = vsel %vm1126_vm0, %v3776_v62, -inf }
 0x2c7   : > { %v3780_v1 = vpop.f32.mrb[26].mxu1  ;;  %v1199_v4 = vsel %vm1126_vm0, %v3778_v63, -inf }
 0x2c8   : > { %1200 = vmax.xlane.f32.xlu0 %v1199_v4  ;;  %v3784_v47 = vpop.f32.mrb[27].mxu1  ;;  %v1208_v8 = vsel %vm1126_vm0, %v3780_v1, -inf }
 0x2c9   : > { %v1202_v3 = vsel %vm1126_vm0, %v3784_v47, -inf }
 0x2ca   : > { %1203 = vmax.xlane.f32.xlu1 %v1202_v3 }
 0x2cc   : > { %1206 = vmax.xlane.f32.xlu0 %v1205_v19 }
 0x2ce   : > { %1209 = vmax.xlane.f32.xlu1 %v1208_v8 }
 0x2d5   : > { %v3792_v11 = vpop.f32.mrb[28].mxu1 }
 0x2d6   : > { %v3794_v16 = vpop.f32.mrb[29].mxu1  ;;  %v1217_v30 = vsel %vm1126_vm0, %v3792_v11, -inf }
 0x2d7   : > { %v3796_v17 = vpop.f32.mrb[30].mxu1  ;;  %v1211_v21 = vsel %vm1126_vm0, %v3794_v16, -inf }
 0x2d8   : > { %1212 = vmax.xlane.f32.xlu0 %v1211_v21  ;;  %v3800_v25 = vpop.f32.mrb[31].mxu1  ;;  %v1220_v32 = vsel %vm1126_vm0, %v3796_v17, -inf }
 0x2d9   : > { %v1214_v29 = vsel %vm1126_vm0, %v3800_v25, -inf }
 0x2da   : > { %1215 = vmax.xlane.f32.xlu1 %v1214_v29 }
 0x2dc   : > { %1218 = vmax.xlane.f32.xlu0 %v1217_v30 }
 0x2de   : > { %1221 = vmax.xlane.f32.xlu1 %v1220_v32 }
 0x2f4   : > { %v1135_v38 = vpop.xlane.xlu1 %1134 }
 0x2f5   : > { %v1225_v40 = vsub.f32 %v3680_v45, %v1135_v38  ;;  %v1129_v41 = vpop.xlane.xlu0 %1128 }
 0x2f6   : > { %v1223_v12 = vsub.f32 %v3682_v5, %v1129_v41 }
 0x2f7   : > { %v1259_v43 = vmul.f32 1.442695, %v1225_v40 }
 0x2f8   : > { %v1255_v48 = vmul.f32 1.442695, %v1223_v12  ;;  %v1138_v50 = vpop.xlane.xlu1 %1137 }
 0x2f9   : > { %2890 = vpow2.f32 %v1259_v43  ;;  %v1226_v51 = vsub.f32 %v3686_v6, %v1138_v50  ;;  %v1132_v55 = vpop.xlane.xlu0 %1131 }
 0x2fa   : > { %v1224_v57 = vsub.f32 %v3690_v7, %v1132_v55  ;;  %2892 = vpow2.f32 %v1255_v48 }
 0x2fb   : > { %v1261_v58 = vmul.f32 1.442695, %v1226_v51 }
 0x2fc   : > { %v1257_v61 = vmul.f32 1.442695, %v1224_v57 }
 0x2fd   : > { %2894 = vpow2.f32 %v1261_v58 }
 0x2fe   : > { %2896 = vpow2.f32 %v1257_v61 }
 0x303   : > { %v3812_v4 = vpop.eup %2890 }
 0x304   : > { %v1147_v45 = vpop.xlane.xlu0 %1146  ;;  %v1325_v5 = vsel %vm1126_vm0, %v3812_v4, 0.0  ;;  %v3816_v3 = vpop.eup %2892 }
 0x305   : > { %v1229_v19 = vsub.f32 %v3696_v9, %v1147_v45  ;;  %1326 = vadd.xlane.f32.xlu0 %v1325_v5  ;;  %v1319_v30 = vsel %vm1126_vm0, %v3816_v3, 0.0 }
 0x306   : > { %v1150_v6 = vpop.xlane.xlu1 %1149 }
 0x307   : > { %v3819_v8 = vpop.eup %2894  ;;  %v1267_v7 = vmul.f32 1.442695, %v1229_v19  ;;  %v1230_v21 = vsub.f32 %v3702_v13, %v1150_v6 }
 0x308   : > { %v1141_v29 = vpop.xlane.xlu0 %1140  ;;  %v1328_v32 = vsel %vm1126_vm0, %v3819_v8, 0.0  ;;  %v3826_v38 = vpop.eup %2896 }
 0x309   : > { %2898 = vpow2.f32 %v1267_v7  ;;  %v1269_v40 = vmul.f32 1.442695, %v1230_v21  ;;  %v1227_v9 = vsub.f32 %v3698_v10, %v1141_v29  ;;  %1320 = vadd.xlane.f32.xlu0 %v1319_v30  ;;  %1329 = vadd.xlane.f32.xlu1 %v1328_v32  ;;  %v1322_v43 = vsel %vm1126_vm0, %v3826_v38, 0.0 }
 0x30a   : > { %v1144_v41 = vpop.xlane.xlu1 %1143 }
 0x30b   : > { %2900 = vpow2.f32 %v1269_v40  ;;  %v1263_v12 = vmul.f32 1.442695, %v1227_v9  ;;  %v1228_v13 = vsub.f32 %v3704_v15, %v1144_v41 }
 0x30d   : > { %2902 = vpow2.f32 %v1263_v12  ;;  %v1265_v48 = vmul.f32 1.442695, %v1228_v13  ;;  %1323 = vadd.xlane.f32.xlu1 %v1322_v43 }
 0x30f   : > { %2904 = vpow2.f32 %v1265_v48 }
 0x313   : > { %v3832_v50 = vpop.eup %2898 }
 0x314   : > { %v1159_v51 = vpop.xlane.xlu0 %1158  ;;  %v1337_v10 = vsel %vm1126_vm0, %v3832_v50, 0.0 }
 0x315   : > { %v3836_v55 = vpop.eup %2900  ;;  %v1233_v57 = vsub.f32 %v3712_v23, %v1159_v51  ;;  %1338 = vadd.xlane.f32.xlu0 %v1337_v10 }
 0x316   : > { %v1162_v58 = vpop.xlane.xlu1 %1161  ;;  %v1340_v15 = vsel %vm1126_vm0, %v3836_v55, 0.0 }
 0x317   : > { %v3841_v61 = vpop.eup %2902  ;;  %v1275_v45 = vmul.f32 1.442695, %v1233_v57  ;;  %v1234_v5 = vsub.f32 %v3718_v27, %v1162_v58  ;;  %1341 = vadd.xlane.f32.xlu1 %v1340_v15 }
 0x318   : > { %v1153_v19 = vpop.xlane.xlu0 %1152  ;;  %v1331_v6 = vsel %vm1126_vm0, %v3841_v61, 0.0 }
 0x319   : > { %v3846_v7 = vpop.eup %2904  ;;  %2906 = vpow2.f32 %v1275_v45  ;;  %v1277_v21 = vmul.f32 1.442695, %v1234_v5  ;;  %v1231_v23 = vsub.f32 %v3714_v24, %v1153_v19  ;;  %1332 = vadd.xlane.f32.xlu0 %v1331_v6 }
 0x31a   : > { %v1156_v29 = vpop.xlane.xlu1 %1155  ;;  %v1334_v30 = vsel %vm1126_vm0, %v3846_v7, 0.0 }
 0x31b   : > { %2908 = vpow2.f32 %v1277_v21  ;;  %v1271_v32 = vmul.f32 1.442695, %v1231_v23  ;;  %v1232_v27 = vsub.f32 %v3720_v28, %v1156_v29  ;;  %1335 = vadd.xlane.f32.xlu1 %v1334_v30 }
 0x31d   : > { %2910 = vpow2.f32 %v1271_v32  ;;  %v1273_v40 = vmul.f32 1.442695, %v1232_v27 }
 0x31f   : > { %2912 = vpow2.f32 %v1273_v40 }
 0x323   : > { %v3852_v9 = vpop.eup %2906 }
 0x324   : > { %v1349_v41 = vsel %vm1126_vm0, %v3852_v9, 0.0 }
 0x325   : > { %v3856_v12 = vpop.eup %2908  ;;  %v1165_v24 = vpop.xlane.xlu0 %1164  ;;  %1350 = vadd.xlane.f32.xlu0 %v1349_v41 }
 0x326   : > { %v1235_v13 = vsub.f32 %v3730_v34, %v1165_v24  ;;  %v1352_v43 = vsel %vm1126_vm0, %v3856_v12, 0.0 }
 0x327   : > { %v3861_v48 = vpop.eup %2910  ;;  %v1168_v28 = vpop.xlane.xlu1 %1167  ;;  %1353 = vadd.xlane.f32.xlu1 %v1352_v43 }
 0x328   : > { %v1279_v51 = vmul.f32 1.442695, %v1235_v13  ;;  %v1236_v10 = vsub.f32 %v3736_v39, %v1168_v28  ;;  %v1343_v57 = vsel %vm1126_vm0, %v3861_v48, 0.0 }
 0x329   : > { %v3866_v58 = vpop.eup %2912  ;;  %v1171_v15 = vpop.xlane.xlu0 %1170  ;;  %1344 = vadd.xlane.f32.xlu0 %v1343_v57 }
 0x32a   : > { %2914 = vpow2.f32 %v1279_v51  ;;  %v1281_v45 = vmul.f32 1.442695, %v1236_v10  ;;  %v1237_v34 = vsub.f32 %v3728_v33, %v1171_v15  ;;  %v1346_v5 = vsel %vm1126_vm0, %v3866_v58, 0.0 }
 0x32b   : > { %v1174_v19 = vpop.xlane.xlu1 %1173  ;;  %1347 = vadd.xlane.f32.xlu1 %v1346_v5 }
 0x32c   : > { %2916 = vpow2.f32 %v1281_v45  ;;  %v1283_v6 = vmul.f32 1.442695, %v1237_v34  ;;  %v1238_v39 = vsub.f32 %v3732_v35, %v1174_v19 }
 0x32e   : > { %2918 = vpow2.f32 %v1283_v6  ;;  %v1285_v21 = vmul.f32 1.442695, %v1238_v39 }
 0x330   : > { %2920 = vpow2.f32 %v1285_v21 }
 0x334   : > { %v3872_v23 = vpop.eup %2914 }
 0x335   : > { %v1177_v29 = vpop.xlane.xlu0 %1176  ;;  %v1355_v30 = vsel %vm1126_vm0, %v3872_v23, 0.0 }
 0x336   : > { %v3876_v32 = vpop.eup %2916  ;;  %v1239_v33 = vsub.f32 %v3746_v18, %v1177_v29  ;;  %1356 = vadd.xlane.f32.xlu0 %v1355_v30 }
 0x337   : > { %v1180_v27 = vpop.xlane.xlu1 %1179  ;;  %v1358_v40 = vsel %vm1126_vm0, %v3876_v32, 0.0 }
 0x338   : > { %v3881_v41 = vpop.eup %2918  ;;  %v1287_v35 = vmul.f32 1.442695, %v1239_v33  ;;  %v1240_v24 = vsub.f32 %v3752_v46, %v1180_v27  ;;  %1359 = vadd.xlane.f32.xlu1 %v1358_v40 }
 0x339   : > { %v1183_v13 = vpop.xlane.xlu0 %1182  ;;  %v1361_v43 = vsel %vm1126_vm0, %v3881_v41, 0.0 }
 0x33a   : > { %v3886_v28 = vpop.eup %2920  ;;  %2922 = vpow2.f32 %v1287_v35  ;;  %v1289_v51 = vmul.f32 1.442695, %v1240_v24  ;;  %v1241_v18 = vsub.f32 %v3744_v14, %v1183_v13  ;;  %1362 = vadd.xlane.f32.xlu0 %v1361_v43 }
 0x33b   : > { %v1186_v10 = vpop.xlane.xlu1 %1185  ;;  %v1364_v57 = vsel %vm1126_vm0, %v3886_v28, 0.0 }
 0x33c   : > { %2924 = vpow2.f32 %v1289_v51  ;;  %v1291_v15 = vmul.f32 1.442695, %v1241_v18  ;;  %v1242_v46 = vsub.f32 %v3748_v22, %v1186_v10  ;;  %1365 = vadd.xlane.f32.xlu1 %v1364_v57 }
 0x33e   : > { %2926 = vpow2.f32 %v1291_v15  ;;  %v1293_v45 = vmul.f32 1.442695, %v1242_v46 }
 0x340   : > { %2928 = vpow2.f32 %v1293_v45 }
 0x344   : > { %v3892_v34 = vpop.eup %2922 }
 0x345   : > { %v1189_v5 = vpop.xlane.xlu0 %1188  ;;  %v1367_v19 = vsel %vm1126_vm0, %v3892_v34, 0.0 }
 0x346   : > { %v3896_v14 = vpop.eup %2924  ;;  %v1243_v6 = vsub.f32 %v3762_v52, %v1189_v5  ;;  %1368 = vadd.xlane.f32.xlu0 %v1367_v19 }
 0x347   : > { %v1192_v39 = vpop.xlane.xlu1 %1191  ;;  %v1370_v21 = vsel %vm1126_vm0, %v3896_v14, 0.0 }
 0x348   : > { %v3901_v22 = vpop.eup %2926  ;;  %v1295_v29 = vmul.f32 1.442695, %v1243_v6  ;;  %v1244_v30 = vsub.f32 %v3768_v56, %v1192_v39  ;;  %1371 = vadd.xlane.f32.xlu1 %v1370_v21 }
 0x349   : > { %v1195_v33 = vpop.xlane.xlu0 %1194  ;;  %v1373_v27 = vsel %vm1126_vm0, %v3901_v22, 0.0 }
 0x34a   : > { %v3906_v40 = vpop.eup %2928  ;;  %2930 = vpow2.f32 %v1295_v29  ;;  %v1297_v35 = vmul.f32 1.442695, %v1244_v30  ;;  %v1245_v52 = vsub.f32 %v3760_v0, %v1195_v33  ;;  %1374 = vadd.xlane.f32.xlu0 %v1373_v27 }
 0x34b   : > { %v1198_v24 = vpop.xlane.xlu1 %1197  ;;  %v1376_v13 = vsel %vm1126_vm0, %v3906_v40, 0.0 }
 0x34c   : > { %2932 = vpow2.f32 %v1297_v35  ;;  %v1299_v43 = vmul.f32 1.442695, %v1245_v52  ;;  %v1246_v56 = vsub.f32 %v3764_v54, %v1198_v24  ;;  %1377 = vadd.xlane.f32.xlu1 %v1376_v13 }
 0x34e   : > { %2934 = vpow2.f32 %v1299_v43  ;;  %v1301_v51 = vmul.f32 1.442695, %v1246_v56 }
 0x350   : > { %2936 = vpow2.f32 %v1301_v51 }
 0x354   : > { %v3912_v18 = vpop.eup %2930 }
 0x355   : > { %v1201_v10 = vpop.xlane.xlu0 %1200  ;;  %v1379_v57 = vsel %vm1126_vm0, %v3912_v18, 0.0 }
 0x356   : > { %v3916_v0 = vpop.eup %2932  ;;  %v1247_v15 = vsub.f32 %v3778_v63, %v1201_v10  ;;  %1380 = vadd.xlane.f32.xlu0 %v1379_v57 }
 0x357   : > { %v1204_v46 = vpop.xlane.xlu1 %1203  ;;  %v1382_v45 = vsel %vm1126_vm0, %v3916_v0, 0.0 }
 0x358   : > { %v3921_v54 = vpop.eup %2934  ;;  %v1303_v5 = vmul.f32 1.442695, %v1247_v15  ;;  %v1248_v19 = vsub.f32 %v3784_v47, %v1204_v46  ;;  %1383 = vadd.xlane.f32.xlu1 %v1382_v45 }
 0x359   : > { %v1207_v6 = vpop.xlane.xlu0 %1206  ;;  %v1385_v39 = vsel %vm1126_vm0, %v3921_v54, 0.0 }
 0x35a   : > { %v3926_v21 = vpop.eup %2936  ;;  %2938 = vpow2.f32 %v1303_v5  ;;  %v1305_v29 = vmul.f32 1.442695, %v1248_v19  ;;  %v1249_v63 = vsub.f32 %v3776_v62, %v1207_v6  ;;  %1386 = vadd.xlane.f32.xlu0 %v1385_v39 }
 0x35b   : > { %v1210_v30 = vpop.xlane.xlu1 %1209  ;;  %v1388_v33 = vsel %vm1126_vm0, %v3926_v21, 0.0 }
 0x35c   : > { %2940 = vpow2.f32 %v1305_v29  ;;  %v1307_v27 = vmul.f32 1.442695, %v1249_v63  ;;  %v1250_v47 = vsub.f32 %v3780_v1, %v1210_v30  ;;  %1389 = vadd.xlane.f32.xlu1 %v1388_v33 }
 0x35e   : > { %2942 = vpow2.f32 %v1307_v27  ;;  %v1309_v35 = vmul.f32 1.442695, %v1250_v47 }
 0x360   : > { %2944 = vpow2.f32 %v1309_v35 }
 0x364   : > { %v3932_v52 = vpop.eup %2938 }
 0x365   : > { %v1213_v24 = vpop.xlane.xlu0 %1212  ;;  %v1391_v13 = vsel %vm1126_vm0, %v3932_v52, 0.0 }
 0x366   : > { %v3936_v62 = vpop.eup %2940  ;;  %v1251_v43 = vsub.f32 %v3794_v16, %v1213_v24  ;;  %1392 = vadd.xlane.f32.xlu0 %v1391_v13 }
 0x367   : > { %v1216_v56 = vpop.xlane.xlu1 %1215  ;;  %v1394_v51 = vsel %vm1126_vm0, %v3936_v62, 0.0 }
 0x368   : > { %v3941_v1 = vpop.eup %2942  ;;  %v1311_v10 = vmul.f32 1.442695, %v1251_v43  ;;  %v1252_v57 = vsub.f32 %v3800_v25, %v1216_v56  ;;  %1395 = vadd.xlane.f32.xlu1 %v1394_v51 }
 0x369   : > { %v1219_v15 = vpop.xlane.xlu0 %1218  ;;  %v1397_v46 = vsel %vm1126_vm0, %v3941_v1, 0.0 }
 0x36a   : > { %v3946_v45 = vpop.eup %2944  ;;  %2946 = vpow2.f32 %v1311_v10  ;;  %v1313_v5 = vmul.f32 1.442695, %v1252_v57  ;;  %v1253_v16 = vsub.f32 %v3792_v11, %v1219_v15  ;;  %1398 = vadd.xlane.f32.xlu0 %v1397_v46 }
 0x36b   : > { %v1222_v19 = vpop.xlane.xlu1 %1221  ;;  %v1400_v6 = vsel %vm1126_vm0, %v3946_v45, 0.0 }
 0x36c   : > { %2948 = vpow2.f32 %v1313_v5  ;;  %v1315_v39 = vmul.f32 1.442695, %v1253_v16  ;;  %v1254_v25 = vsub.f32 %v3796_v17, %v1222_v19  ;;  %1401 = vadd.xlane.f32.xlu1 %v1400_v6 }
 0x36e   : > { %2950 = vpow2.f32 %v1315_v39  ;;  %v1317_v29 = vmul.f32 1.442695, %v1254_v25 }
 0x370   : > { %2952 = vpow2.f32 %v1317_v29 }
 0x374   : > { %v3952_v63 = vpop.eup %2946 }
 0x375   : > { %v1403_v30 = vsel %vm1126_vm0, %v3952_v63, 0.0 }
 0x376   : > { %v3956_v33 = vpop.eup %2948  ;;  %1404 = vadd.xlane.f32.xlu0 %v1403_v30 }
 0x377   : > { %v1406_v11 = vsel %vm1126_vm0, %v3956_v33, 0.0 }
 0x378   : > { %v3960_v27 = vpop.eup %2950  ;;  %1407 = vadd.xlane.f32.xlu1 %v1406_v11 }
 0x379   : > { %v1409_v17 = vsel %vm1126_vm0, %v3960_v27, 0.0 }
 0x37a   : > { %v3964_v47 = vpop.eup %2952  ;;  %1410 = vadd.xlane.f32.xlu0 %v1409_v17 }
 0x37b   : > { %v1412_v35 = vsel %vm1126_vm0, %v3964_v47, 0.0 }
 0x37c   : > { %1413 = vadd.xlane.f32.xlu1 %v1412_v35 }
 0x392   : > { %v1327_v24 = vpop.xlane.xlu0 %1326 }
 0x396   : > { %v1321_v13 = vpop.xlane.xlu0 %1320  ;;  %v1330_v43 = vpop.xlane.xlu1 %1329 }
 0x397   : > { %2954 = vrcp.f32 %v1330_v43 }
 0x398   : > { %2956 = vrcp.f32 %v1321_v13 }
 0x399   : > { %2958 = vrcp.f32 %v1327_v24 }
 0x39a   : > { %v1324_v56 = vpop.xlane.xlu1 %1323 }
 0x39b   : > { %2960 = vrcp.f32 %v1324_v56 }
 0x3a1   : > { %v2955_v51 = vpop.eup %2954 }
 0x3a2   : > { %v1339_v10 = vpop.xlane.xlu0 %1338  ;;  %v2957_v57 = vpop.eup %2956  ;;  %v1422_v16 = vmul.f32 %v2955_v51, %v3819_v8 }
 0x3a3   : > { %v2959_v15 = vpop.eup %2958  ;;  %v1416_v6 = vmul.f32 %v2957_v57, %v3816_v3 }
 0x3a4   : > { %v1342_v46 = vpop.xlane.xlu1 %1341  ;;  %v1420_v25 = vmul.f32 %v2959_v15, %v3812_v4 }
 0x3a5   : > { %v2961_v5 = vpop.eup %2960  ;;  %2962 = vrcp.f32 %v1342_v46 }
 0x3a6   : > { %v1333_v19 = vpop.xlane.xlu0 %1332  ;;  %v1418_v39 = vmul.f32 %v2961_v5, %v3826_v38  ;;  %v1480_v11 = vpack.c.bf16 %v1422_v16, %v1420_v25 }
 0x3a7   : > { %2964 = vrcp.f32 %v1333_v19 }
 0x3a8   : > { %2966 = vrcp.f32 %v1339_v10  ;;  %v1336_v29 = vpop.xlane.xlu1 %1335  ;;  %v1479_v30 = vpack.c.bf16 %v1418_v39, %v1416_v6 }
 0x3a9   : > { %2968 = vrcp.f32 %v1336_v29 }
 0x3aa   : > { %2652 = vmatprep.mubr.msk.bf16.mxu1 %vm1126_vm0, %v1479_v30 }
 0x3ab   : > { %2653 = vmatmul.mubr.msk.bf16.vlgmr.msra.gmra.mrb[32].mxu1 %vm1126_vm0, %v1480_v11 }
 0x3ac   : > { %2657 = vmatpush3.bf16.msra.mxu1 %v3559_v26 }
 0x3ad   : > { %2658 = vmatprep.subr.bf16.mxu1 %v3567_v31 }
 0x3af   : > { %v2963_v8 = vpop.eup %2962 }
 0x3b0   : > { %2659 = vmatpush3.bf16.msra.mxu1 %v3567_v31  ;;  %v1430_v35 = vmul.f32 %v2963_v8, %v3836_v55 }
 0x3b1   : > { %v2965_v3 = vpop.eup %2964  ;;  %2664 = vmatprep.subr.bf16.mxu1 %v3575_v37 }
 0x3b2   : > { %v2967_v4 = vpop.eup %2966  ;;  %v1351_v38 = vpop.xlane.xlu0 %1350  ;;  %v1424_v13 = vmul.f32 %v2965_v3, %v3841_v61 }
 0x3b3   : > { %v2969_v17 = vpop.eup %2968  ;;  %v1428_v26 = vmul.f32 %v2967_v4, %v3832_v50 }
 0x3b4   : > { %v1354_v24 = vpop.xlane.xlu1 %1353  ;;  %v1426_v43 = vmul.f32 %v2969_v17, %v3846_v7 }
 0x3b5   : > { %2970 = vrcp.f32 %v1354_v24  ;;  %v1482_v31 = vpack.c.bf16 %v1430_v35, %v1428_v26 }
 0x3b6   : > { %v1345_v56 = vpop.xlane.xlu0 %1344  ;;  %v1481_v51 = vpack.c.bf16 %v1426_v43, %v1424_v13 }
 0x3b7   : > { %2972 = vrcp.f32 %v1345_v56 }
 0x3b8   : > { %2974 = vrcp.f32 %v1351_v38  ;;  %2660 = vmatprep.mubr.msk.bf16.mxu1 %vm1126_vm0, %v1481_v51  ;;  %v1348_v10 = vpop.xlane.xlu1 %1347 }
 0x3b9   : > { %2976 = vrcp.f32 %v1348_v10  ;;  %2661 = vmatmul.mubr.msk.bf16.vlgmr.msra.gmra.mrb[36].mxu1 %vm1126_vm0, %v1482_v31 }
 0x3ba   : > { %2665 = vmatpush3.bf16.msra.mxu1 %v3575_v37 }
 0x3bb   : > { %2666 = vmatprep.subr.bf16.mxu1 %v3583_v42 }
 0x3be   : > { %2667 = vmatpush3.bf16.msra.mxu1 %v3583_v42 }
 0x3bf   : > { %2680 = vmatprep.subr.bf16.mxu1 %v3499_v36  ;;  %v2971_v50 = vpop.eup %2970 }
 0x3c0   : > { %v1438_v57 = vmul.f32 %v2971_v50, %v3856_v12 }
 0x3c1   : > { %v2973_v55 = vpop.eup %2972 }
 0x3c2   : > { %v2975_v61 = vpop.eup %2974  ;;  %v1432_v46 = vmul.f32 %v2973_v55, %v3861_v48 }
 0x3c3   : > { %v2977_v7 = vpop.eup %2976  ;;  %v1357_v15 = vpop.xlane.xlu0 %1356  ;;  %v1436_v37 = vmul.f32 %v2975_v61, %v3852_v9 }
 0x3c4   : > { %2978 = vrcp.f32 %v1357_v15  ;;  %v1434_v5 = vmul.f32 %v2977_v7, %v3866_v58 }
 0x3c5   : > { %v1360_v16 = vpop.xlane.xlu1 %1359  ;;  %v1484_v6 = vpack.c.bf16 %v1438_v57, %v1436_v37 }
 0x3c6   : > { %2980 = vrcp.f32 %v1360_v16  ;;  %v1483_v19 = vpack.c.bf16 %v1434_v5, %v1432_v46 }
 0x3c7   : > { %v1363_v42 = vpop.xlane.xlu0 %1362 }
 0x3c8   : > { %2982 = vrcp.f32 %v1363_v42  ;;  %2668 = vmatprep.mubr.msk.bf16.mxu1 %vm1126_vm0, %v1483_v19 }
 0x3c9   : > { %2669 = vmatmul.mubr.msk.bf16.vlgmr.msra.gmra.mrb[40].mxu1 %vm1126_vm0, %v1484_v6  ;;  %v1366_v39 = vpop.xlane.xlu1 %1365 }
 0x3ca   : > { %2984 = vrcp.f32 %v1366_v39  ;;  %2681 = vmatpush3.bf16.msra.mxu1 %v3499_v36 }
 0x3cb   : > { %2682 = vmatprep.subr.bf16.mxu1 %v3507_v44 }
 0x3ce   : > { %v2979_v12 = vpop.eup %2978  ;;  %2683 = vmatpush3.bf16.msra.mxu1 %v3507_v44 }
 0x3cf   : > { %2696 = vmatprep.subr.bf16.mxu1 %v3518_v53  ;;  %v1440_v48 = vmul.f32 %v2979_v12, %v3872_v23  ;;  %v2884_v12 = vld [vmem:[#allocation8 + $0x10] sm:$0xff]  }
 0x3d0   : > { %v2981_v9 = vpop.eup %2980 }
 0x3d1   : > { %v1442_v58 = vmul.f32 %v2981_v9, %v3876_v32 }
 0x3d2   : > { %v2983_v25 = vpop.eup %2982 }
 0x3d3   : > { %v1369_v29 = vpop.xlane.xlu0 %1368  ;;  %v1485_v30 = vpack.c.bf16 %v1442_v58, %v1440_v48  ;;  %v1444_v8 = vmul.f32 %v2983_v25, %v3881_v41  ;;  %v2885_v58 = vld [vmem:[#allocation8 + $0x18] sm:$0xff]  }
 0x3d4   : > { %v2985_v11 = vpop.eup %2984  ;;  %2986 = vrcp.f32 %v1369_v29 }
 0x3d5   : > { %v1446_v36 = vmul.f32 %v2985_v11, %v3886_v28  ;;  %2676 = vmatprep.mubr.msk.bf16.mxu0 %vm1126_vm0, %v1485_v30  ;;  %v1372_v3 = vpop.xlane.xlu1 %1371 }
 0x3d6   : > { %2988 = vrcp.f32 %v1372_v3 }
 0x3d7   : > { %v1486_v44 = vpack.c.bf16 %v1446_v36, %v1444_v8  ;;  %v1375_v4 = vpop.xlane.xlu0 %1374  ;;  %v2886_v36 = vld [vmem:[#allocation8 + $0x20] sm:$0xff]  }
 0x3d8   : > { %2990 = vrcp.f32 %v1375_v4 }
 0x3d9   : > { %2677 = vmatmul.mubr.msk.bf16.vlgmr.msra.gmra.mrb[64].mxu0 %vm1126_vm0, %v1486_v44  ;;  %v1378_v23 = vpop.xlane.xlu1 %1377 }
 0x3da   : > { %2992 = vrcp.f32 %v1378_v23  ;;  %2689 = vmatpush3.bf16.msra.mxu0 %v3550_v20 }
 0x3db   : > { %2690 = vmatprep.subr.bf16.mxu0 %v3513_v49 }
 0x3de   : > { %v2987_v32 = vpop.eup %2986  ;;  %2691 = vmatpush3.bf16.msra.mxu0 %v3513_v49 }
 0x3df   : > { %2704 = vmatprep.subr.bf16.mxu0 %v3526_v60  ;;  %v1448_v28 = vmul.f32 %v2987_v32, %v3892_v34 }
 0x3e0   : > { %v2989_v41 = vpop.eup %2988 }
 0x3e1   : > { %v1450_v38 = vmul.f32 %v2989_v41, %v3896_v14  ;;  %v4016_v14 = vld [vmem:[#allocation8] sm:$0xff]  }
 0x3e2   : > { %v2991_v17 = vpop.eup %2990 }
 0x3e3   : > { %v1381_v35 = vpop.xlane.xlu0 %1380  ;;  %v1487_v24 = vpack.c.bf16 %v1450_v38, %v1448_v28  ;;  %v1452_v43 = vmul.f32 %v2991_v17, %v3901_v22 }
 0x3e4   : > { %v2993_v13 = vpop.eup %2992  ;;  %2994 = vrcp.f32 %v1381_v35 }
 0x3e5   : > { %v1454_v20 = vmul.f32 %v2993_v13, %v3906_v40  ;;  %2684 = vmatprep.mubr.msk.bf16.mxu1 %vm1126_vm0, %v1487_v24  ;;  %v1384_v26 = vpop.xlane.xlu1 %1383 }
 0x3e6   : > { %2996 = vrcp.f32 %v1384_v26 }
 0x3e7   : > { %v1387_v49 = vpop.xlane.xlu0 %1386  ;;  %v1488_v56 = vpack.c.bf16 %v1454_v20, %v1452_v43 }
 0x3e8   : > { %2998 = vrcp.f32 %v1387_v49 }
 0x3e9   : > { %2685 = vmatmul.mubr.msk.bf16.vlgmr.msra.gmra.mrb[44].mxu1 %vm1126_vm0, %v1488_v56  ;;  %v1390_v34 = vpop.xlane.xlu1 %1389 }
 0x3ea   : > { %3000 = vrcp.f32 %v1390_v34  ;;  %2697 = vmatpush3.bf16.msra.mxu1 %v3518_v53 }
 0x3eb   : > { %2698 = vmatprep.subr.bf16.mxu1 %v3524_v59 }
 0x3ee   : > { %v2995_v22 = vpop.eup %2994  ;;  %2699 = vmatpush3.bf16.msra.mxu1 %v3524_v59 }
 0x3ef   : > { %2760 = vmatprep.subr.bf16.mxu1 %v4016_v14  ;;  %v1456_v51 = vmul.f32 %v2995_v22, %v3912_v18 }
 0x3f0   : > { %v2997_v40 = vpop.eup %2996 }
 0x3f1   : > { %v1458_v31 = vmul.f32 %v2997_v40, %v3916_v0 }
 0x3f2   : > { %v2999_v10 = vpop.eup %2998 }
 0x3f3   : > { %v1393_v50 = vpop.xlane.xlu0 %1392  ;;  %v1489_v55 = vpack.c.bf16 %v1458_v31, %v1456_v51  ;;  %v1460_v53 = vmul.f32 %v2999_v10, %v3921_v54 }
 0x3f4   : > { %v3001_v61 = vpop.eup %3000  ;;  %3002 = vrcp.f32 %v1393_v50 }
 0x3f5   : > { %v1462_v7 = vmul.f32 %v3001_v61, %v3926_v21  ;;  %2692 = vmatprep.mubr.msk.bf16.mxu0 %vm1126_vm0, %v1489_v55  ;;  %v1396_v57 = vpop.xlane.xlu1 %1395 }
 0x3f6   : > { %3004 = vrcp.f32 %v1396_v57 }
 0x3f7   : > { %v1399_v59 = vpop.xlane.xlu0 %1398  ;;  %v1490_v15 = vpack.c.bf16 %v1462_v7, %v1460_v53 }
 0x3f8   : > { %3006 = vrcp.f32 %v1399_v59 }
 0x3f9   : > { %2693 = vmatmul.mubr.msk.bf16.vlgmr.msra.gmra.mrb[68].mxu0 %vm1126_vm0, %v1490_v15  ;;  %v1402_v18 = vpop.xlane.xlu1 %1401 }
 0x3fa   : > { %3008 = vrcp.f32 %v1402_v18  ;;  %2705 = vmatpush3.bf16.msra.mxu0 %v3526_v60 }
 0x3fb   : > { %2706 = vmatprep.subr.bf16.mxu0 %v3532_v2 }
 0x3fe   : > { %v3003_v0 = vpop.eup %3002  ;;  %2707 = vmatpush3.bf16.msra.mxu0 %v3532_v2 }
 0x3ff   : > { %2712 = vmatprep.subr.bf16.mxu0 %v4016_v14  ;;  %v1464_v21 = vmul.f32 %v3003_v0, %v3932_v52 }
 0x400   : > { %v3005_v54 = vpop.eup %3004 }
 0x401   : > { %v1466_v46 = vmul.f32 %v3005_v54, %v3936_v62  ;;  %v2883_v62 = vld [vmem:[#allocation8 + $0x8] sm:$0xff]  }
 0x402   : > { %v3007_v5 = vpop.eup %3006 }
 0x403   : > { %v1405_v37 = vpop.xlane.xlu0 %1404  ;;  %v1491_v16 = vpack.c.bf16 %v1466_v46, %v1464_v21  ;;  %v1468_v42 = vmul.f32 %v3007_v5, %v3941_v1 }
 0x404   : > { %v3009_v19 = vpop.eup %3008  ;;  %3010 = vrcp.f32 %v1405_v37 }
 0x405   : > { %v1470_v60 = vmul.f32 %v3009_v19, %v3946_v45  ;;  %2700 = vmatprep.mubr.msk.bf16.mxu1 %vm1126_vm0, %v1491_v16  ;;  %v1408_v6 = vpop.xlane.xlu1 %1407 }
 0x406   : > { %3012 = vrcp.f32 %v1408_v6 }
 0x407   : > { %v1411_v2 = vpop.xlane.xlu0 %1410  ;;  %v1492_v39 = vpack.c.bf16 %v1470_v60, %v1468_v42 }
 0x408   : > { %3014 = vrcp.f32 %v1411_v2 }
 0x409   : > { %2701 = vmatmul.mubr.msk.bf16.vlgmr.msra.gmra.mrb[48].mxu1 %vm1126_vm0, %v1492_v39  ;;  %v1414_v52 = vpop.xlane.xlu1 %1413 }
 0x40a   : > { %3016 = vrcp.f32 %v1414_v52  ;;  %2768 = vmatpush3.bf16.msra.mxu1 %v4016_v14 }
 0x40b   : > { %2761 = vmatprep.subr.bf16.mxu1 %v2883_v62 }
 0x40e   : > { %v3011_v9 = vpop.eup %3010  ;;  %2769 = vmatpush3.bf16.msra.mxu1 %v2883_v62 }
 0x40f   : > { %2762 = vmatprep.subr.bf16.mxu1 %v2884_v12  ;;  %v1472_v45 = vmul.f32 %v3011_v9, %v3952_v63  ;;  %v2887_v63 = vld [vmem:[#allocation8 + $0x28] sm:$0xff]  }
 0x410   : > { %v3013_v1 = vpop.eup %3012 }
 0x411   : > { %v1474_v48 = vmul.f32 %v3013_v1, %v3956_v33  ;;  %v2888_v33 = vld [vmem:[#allocation8 + $0x30] sm:$0xff]  }
 0x412   : > { %v3015_v25 = vpop.eup %3014  ;;  %2770 = vmatpush3.bf16.msra.mxu1 %v2884_v12 }
 0x413   : > { %v1493_v29 = vpack.c.bf16 %v1474_v48, %v1472_v45  ;;  %2763 = vmatprep.subr.bf16.mxu1 %v2885_v58  ;;  %v1476_v11 = vmul.f32 %v3015_v25, %v3960_v27  ;;  %v2889_v27 = vld [vmem:[#allocation8 + $0x38] sm:$0xff]  }
 0x414   : > { %v3017_v30 = vpop.eup %3016 }
 0x415   : > { %v1478_v8 = vmul.f32 %v3017_v30, %v3964_v47  ;;  %2708 = vmatprep.mubr.msk.bf16.mxu0 %vm1126_vm0, %v1493_v29 }
 0x416   : > { %2771 = vmatpush3.bf16.msra.mxu1 %v2885_v58 }
 0x417   : > { %v1494_v3 = vpack.c.bf16 %v1478_v8, %v1476_v11  ;;  %2764 = vmatprep.subr.bf16.mxu1 %v2886_v36 }
 0x419   : > { %2709 = vmatmul.mubr.msk.bf16.vlgmr.msra.gmra.mrb[72].mxu0 %vm1126_vm0, %v1494_v3 }
 0x41a   : > { %2713 = vmatpush3.bf16.msra.mxu0 %v4016_v14  ;;  %2772 = vmatpush3.bf16.msra.mxu1 %v2886_v36 }
 0x41b   : > { %2714 = vmatprep.subr.bf16.mxu0 %v2883_v62  ;;  %2765 = vmatprep.subr.bf16.mxu1 %v2887_v63 }
 0x41e   : > { %2715 = vmatpush3.bf16.msra.mxu0 %v2883_v62  ;;  %2773 = vmatpush3.bf16.msra.mxu1 %v2887_v63 }
 0x41f   : > { %2716 = vmatprep.subr.bf16.mxu0 %v2884_v12  ;;  %2766 = vmatprep.subr.bf16.mxu1 %v2888_v33 }
 0x422   : > { %2717 = vmatpush3.bf16.msra.mxu0 %v2884_v12  ;;  %2774 = vmatpush3.bf16.msra.mxu1 %v2888_v33  ;;  %v4047_v12 = vld [vmem:[%s4135_s5] ss:$0 sm:$0xff] }
 0x423   : > { %2718 = vmatprep.subr.bf16.mxu0 %v2885_v58  ;;  %2767 = vmatprep.subr.bf16.mxu1 %v2889_v27 }
 0x426   : > { %2719 = vmatpush3.bf16.msra.mxu0 %v2885_v58  ;;  %2775 = vmatpush3.bf16.msra.mxu1 %v2889_v27 }
 0x427   : > { %2720 = vmatprep.subr.bf16.mxu0 %v2886_v36 }
 0x42a   : > { %2721 = vmatpush3.bf16.msra.mxu0 %v2886_v36 }
 0x42b   : > { %2722 = vmatprep.subr.bf16.mxu0 %v2887_v63 }
 0x42e   : > { %2723 = vmatpush3.bf16.msra.mxu0 %v2887_v63 }
 0x42f   : > { %2724 = vmatprep.subr.bf16.mxu0 %v2888_v33 }
 0x432   : > { %2725 = vmatpush3.bf16.msra.mxu0 %v2888_v33 }
 0x433   : > { %2726 = vmatprep.subr.bf16.mxu0 %v2889_v27 }
 0x436   : > { %2727 = vmatpush3.bf16.msra.mxu0 %v2889_v27 }
 0x47e   : > { %v2654_v47 = vpop.f32.mrb[32].mxu1 }
 0x47f   : > { %v1535_v44 = vpop.f32.mrb[33].mxu1 }
 0x480   : > { %v2655_v4 = vpop.f32.mrb[34].mxu1 }
 0x481   : > { %v1936_v23 = vpack.c.bf16 %v2655_v4, %v2654_v47  ;;  %v1538_v32 = vpop.f32.mrb[35].mxu1 }
 0x482   : > { %v1935_v41 = vpack.c.bf16 %v1538_v32, %v1535_v44 }
 0x484   : > { %2728 = vmatprep.mubr.bf16.mxu0 %v1935_v41 }
 0x485   : > { %2729 = vmatmul.mubr.bf16.vlgmr.msra.gmra.mrb[76].mxu0 %v1936_v23 }
 0x48c   : > { %v2662_v28 = vpop.f32.mrb[36].mxu1 }
 0x48d   : > { %v1590_v38 = vpop.f32.mrb[37].mxu1 }
 0x48e   : > { %v2663_v17 = vpop.f32.mrb[38].mxu1 }
 0x48f   : > { %v1938_v35 = vpack.c.bf16 %v2663_v17, %v2662_v28  ;;  %v1593_v24 = vpop.f32.mrb[39].mxu1 }
 0x490   : > { %v1937_v13 = vpack.c.bf16 %v1593_v24, %v1590_v38 }
 0x492   : > { %2732 = vmatprep.mubr.bf16.mxu0 %v1937_v13 }
 0x493   : > { %2733 = vmatmul.mubr.bf16.gmra.mrb[80].mxu0 %v1938_v35 }
 0x49c   : > { %v2670_v43 = vpop.f32.mrb[40].mxu1 }
 0x49d   : > { %v1645_v20 = vpop.f32.mrb[41].mxu1 }
 0x49e   : > { %v2671_v26 = vpop.f32.mrb[42].mxu1 }
 0x49f   : > { %v1940_v49 = vpack.c.bf16 %v2671_v26, %v2670_v43  ;;  %v1648_v56 = vpop.f32.mrb[43].mxu1 }
 0x4a0   : > { %v1939_v34 = vpack.c.bf16 %v1648_v56, %v1645_v20 }
 0x4a2   : > { %2736 = vmatprep.mubr.bf16.mxu0 %v1939_v34 }
 0x4a3   : > { %2737 = vmatmul.mubr.bf16.gmra.mrb[84].mxu0 %v1940_v49 }
 0x4ac   : > { %v2678_v14 = vpop.f32.mrb[64].mxu0 }
 0x4ad   : > { %v1700_v22 = vpop.f32.mrb[65].mxu0 }
 0x4ae   : > { %v2679_v40 = vpop.f32.mrb[66].mxu0 }
 0x4af   : > { %v1942_v51 = vpack.c.bf16 %v2679_v40, %v2678_v14  ;;  %v1703_v31 = vpop.f32.mrb[67].mxu0 }
 0x4b0   : > { %v1941_v10 = vpack.c.bf16 %v1703_v31, %v1700_v22 }
 0x4b2   : > { %2740 = vmatprep.mubr.bf16.mxu1 %v1941_v10 }
 0x4b3   : > { %2741 = vmatmul.mubr.bf16.vlgmr.msra.gmra.mrb[52].mxu1 %v1942_v51 }
 0x4bc   : > { %v2686_v50 = vpop.f32.mrb[44].mxu1 }
 0x4bd   : > { %v1755_v55 = vpop.f32.mrb[45].mxu1 }
 0x4be   : > { %v2687_v61 = vpop.f32.mrb[46].mxu1 }
 0x4bf   : > { %v1944_v53 = vpack.c.bf16 %v2687_v61, %v2686_v50  ;;  %v1758_v7 = vpop.f32.mrb[47].mxu1 }
 0x4c0   : > { %v1943_v57 = vpack.c.bf16 %v1758_v7, %v1755_v55 }
 0x4c2   : > { %2744 = vmatprep.mubr.bf16.mxu1 %v1943_v57 }
 0x4c3   : > { %2745 = vmatmul.mubr.bf16.gmra.mrb[56].mxu1 %v1944_v53 }
 0x4cc   : > { %v2694_v59 = vpop.f32.mrb[68].mxu0 }
 0x4cd   : > { %v1810_v15 = vpop.f32.mrb[69].mxu0 }
 0x4ce   : > { %v2695_v18 = vpop.f32.mrb[70].mxu0 }
 0x4cf   : > { %v1946_v0 = vpack.c.bf16 %v2695_v18, %v2694_v59  ;;  %v1813_v54 = vpop.f32.mrb[71].mxu0 }
 0x4d0   : > { %v1945_v21 = vpack.c.bf16 %v1813_v54, %v1810_v15 }
 0x4d2   : > { %2748 = vmatprep.mubr.bf16.mxu1 %v1945_v21 }
 0x4d3   : > { %2749 = vmatmul.mubr.bf16.gmra.mrb[60].mxu1 %v1946_v0 }
 0x4dc   : > { %v2702_v46 = vpop.f32.mrb[48].mxu1 }
 0x4dd   : > { %v1865_v5 = vpop.f32.mrb[49].mxu1 }
 0x4de   : > { %v2703_v37 = vpop.f32.mrb[50].mxu1 }
 0x4df   : > { %v1948_v16 = vpack.c.bf16 %v2703_v37, %v2702_v46  ;;  %v1868_v19 = vpop.f32.mrb[51].mxu1 }
 0x4e0   : > { %v1947_v42 = vpack.c.bf16 %v1868_v19, %v1865_v5 }
 0x4e2   : > { %2752 = vmatprep.mubr.bf16.mxu1 %v1947_v42 }
 0x4e3   : > { %2753 = vmatmul.mubr.bf16.gmra.mrb[64].mxu1 %v1948_v16 }
 0x4ec   : > { %v2710_v60 = vpop.f32.mrb[72].mxu0 }
 0x4ed   : > { %v1920_v6 = vpop.f32.mrb[73].mxu0 }
 0x4ee   : > { %v2711_v2 = vpop.f32.mrb[74].mxu0 }
 0x4ef   : > { %v1950_v39 = vpack.c.bf16 %v2711_v2, %v2710_v60  ;;  %v1923_v52 = vpop.f32.mrb[75].mxu0 }
 0x4f0   : > { %v1949_v62 = vpack.c.bf16 %v1923_v52, %v1920_v6 }
 0x4f2   : > { %2756 = vmatprep.mubr.bf16.mxu1 %v1949_v62 }
 0x4f3   : > { %2757 = vmatmul.mubr.bf16.gmra.mrb[68].mxu1 %v1950_v39 }
 0x558   : > { %v2730_v9 = vpop.f32.mrb[76].mxu0 }
 0x559   : > { %v2056_v1 = vpop.f32.mrb[77].mxu0  ;;  %v2065_v25 = vadd.f32 %v2730_v9, %v4047_v12 }
 0x55a   : > { %v2057_v45 = vadd.f32 %v4047_v12, %v2056_v1  ;;  %v2731_v48 = vpop.f32.mrb[78].mxu0 }
 0x55b   : > { %v2059_v58 = vpop.f32.mrb[79].mxu0  ;;  %v2068_v11 = vadd.f32 %v2731_v48, %v4047_v12  ;;  %v2185_v36 = vmax.f32 %v2065_v25, 0.0 }
 0x55c   : > { %v2060_v29 = vadd.f32 %v4047_v12, %v2059_v58  ;;  %v2183_v30 = vmax.f32 %v2057_v45, 0.0 }
 0x55d   : > { %v2186_v63 = vmax.f32 %v2068_v11, 0.0 }
 0x55e   : > { %v2184_v8 = vmax.f32 %v2060_v29, 0.0 }
 0x560   : > { %v2215_v3 = vadd.f32 %v2184_v8, %v2183_v30 }
 0x562   : > { %v2216_v33 = vadd.f32 %v2215_v3, %v2185_v36 }
 0x564   : > { %v2217_v27 = vadd.f32 %v2216_v33, %v2186_v63 }
 0x566   : > { %v2734_v47 = vpop.f32.mrb[80].mxu0  ;;  %v2218_v44 = vrot.slane %v2217_v27, 4 }
 0x567   : > { %v2072_v4 = vpop.f32.mrb[81].mxu0  ;;  %v2081_v28 = vadd.f32 %v2734_v47, %v4047_v12 }
 0x568   : > { %v2073_v23 = vadd.f32 %v4047_v12, %v2072_v4  ;;  %v2735_v32 = vpop.f32.mrb[82].mxu0  ;;  %v2219_v17 = vadd.f32 %v2218_v44, %v2217_v27 }
 0x569   : > { %v2075_v41 = vpop.f32.mrb[83].mxu0  ;;  %v2084_v24 = vadd.f32 %v2735_v32, %v4047_v12  ;;  %v2189_v43 = vmax.f32 %v2081_v28, 0.0 }
 0x56a   : > { %v2076_v38 = vadd.f32 %v4047_v12, %v2075_v41  ;;  %v2187_v35 = vmax.f32 %v2073_v23, 0.0  ;;  %v2220_v26 = vrot.slane %v2219_v17, 2 }
 0x56b   : > { %v2190_v49 = vmax.f32 %v2084_v24, 0.0 }
 0x56c   : > { %v2188_v13 = vmax.f32 %v2076_v38, 0.0  ;;  %v2221_v14 = vadd.f32 %v2220_v26, %v2219_v17 }
 0x56e   : > { %v2224_v20 = vadd.f32 %v2188_v13, %v2187_v35  ;;  %v2222_v31 = vrot.slane %v2221_v14, 1 }
 0x570   : > { %v2225_v56 = vadd.f32 %v2224_v20, %v2189_v43  ;;  %v2223_v15 = vadd.f32 %v2222_v31, %v2221_v14 }
 0x572   : > { %v2226_v34 = vadd.f32 %v2225_v56, %v2190_v49  ;;  %v2288_v16 = vmul.f32 0.03125, %v2223_v15 }
 0x574   : > { %v2227_v22 = vrot.slane %v2226_v34, 4 }
 0x576   : > { %v2228_v40 = vadd.f32 %v2227_v22, %v2226_v34  ;;  %v2738_v51 = vpop.f32.mrb[84].mxu0 }
 0x577   : > { %v2088_v10 = vpop.f32.mrb[85].mxu0  ;;  %v2097_v57 = vadd.f32 %v2738_v51, %v4047_v12 }
 0x578   : > { %v2229_v50 = vrot.slane %v2228_v40, 2  ;;  %v2089_v55 = vadd.f32 %v4047_v12, %v2088_v10  ;;  %v2739_v61 = vpop.f32.mrb[86].mxu0 }
 0x579   : > { %v2091_v53 = vpop.f32.mrb[87].mxu0  ;;  %v2100_v54 = vadd.f32 %v2739_v61, %v4047_v12  ;;  %v2193_v5 = vmax.f32 %v2097_v57, 0.0 }
 0x57a   : > { %v2230_v7 = vadd.f32 %v2229_v50, %v2228_v40  ;;  %v2092_v59 = vadd.f32 %v4047_v12, %v2091_v53  ;;  %v2191_v0 = vmax.f32 %v2089_v55, 0.0 }
 0x57b   : > { %v2194_v42 = vmax.f32 %v2100_v54, 0.0 }
 0x57c   : > { %v2231_v18 = vrot.slane %v2230_v7, 1  ;;  %v2192_v21 = vmax.f32 %v2092_v59, 0.0 }
 0x57e   : > { %v2232_v46 = vadd.f32 %v2231_v18, %v2230_v7  ;;  %v2233_v37 = vadd.f32 %v2192_v21, %v2191_v0 }
 0x580   : > { %v2289_v19 = vmul.f32 0.03125, %v2232_v46  ;;  %v2234_v60 = vadd.f32 %v2233_v37, %v2193_v5 }
 0x582   : > { %v2305_v6 = vsel %vm2304_vm1, %v2289_v19, %v2288_v16  ;;  %v2235_v2 = vadd.f32 %v2234_v60, %v2194_v42 }
 0x584   : > { %v2236_v39 = vrot.slane %v2235_v2, 4 }
 0x586   : > { %v2237_v52 = vadd.f32 %v2236_v39, %v2235_v2  ;;  %v2742_v62 = vpop.f32.mrb[52].mxu1 }
 0x587   : > { %v2104_v9 = vpop.f32.mrb[53].mxu1  ;;  %v2113_v29 = vadd.f32 %v2742_v62, %v4047_v12 }
 0x588   : > { %v2238_v1 = vrot.slane %v2237_v52, 2  ;;  %v2105_v45 = vadd.f32 %v4047_v12, %v2104_v9  ;;  %v2743_v48 = vpop.f32.mrb[54].mxu1 }
 0x589   : > { %v2107_v58 = vpop.f32.mrb[55].mxu1  ;;  %v2116_v36 = vadd.f32 %v2743_v48, %v4047_v12  ;;  %v2197_v33 = vmax.f32 %v2113_v29, 0.0 }
 0x58a   : > { %v2239_v25 = vadd.f32 %v2238_v1, %v2237_v52  ;;  %v2108_v30 = vadd.f32 %v4047_v12, %v2107_v58  ;;  %v2195_v8 = vmax.f32 %v2105_v45, 0.0 }
 0x58b   : > { %v2198_v44 = vmax.f32 %v2116_v36, 0.0 }
 0x58c   : > { %v2240_v11 = vrot.slane %v2239_v25, 1  ;;  %v2196_v3 = vmax.f32 %v2108_v30, 0.0 }
 0x58e   : > { %v2241_v63 = vadd.f32 %v2240_v11, %v2239_v25  ;;  %v2242_v27 = vadd.f32 %v2196_v3, %v2195_v8 }
 0x590   : > { %v2290_v47 = vmul.f32 0.03125, %v2241_v63  ;;  %v2243_v4 = vadd.f32 %v2242_v27, %v2197_v33 }
 0x592   : > { %v2307_v23 = vsel %vm2306_vm2, %v2290_v47, %v2305_v6  ;;  %v2244_v32 = vadd.f32 %v2243_v4, %v2198_v44 }
 0x594   : > { %v2245_v41 = vrot.slane %v2244_v32, 4 }
 0x596   : > { %v2246_v28 = vadd.f32 %v2245_v41, %v2244_v32  ;;  %v2746_v38 = vpop.f32.mrb[56].mxu1 }
 0x597   : > { %v2120_v17 = vpop.f32.mrb[57].mxu1  ;;  %v2129_v26 = vadd.f32 %v2746_v38, %v4047_v12 }
 0x598   : > { %v2247_v35 = vrot.slane %v2246_v28, 2  ;;  %v2121_v24 = vadd.f32 %v4047_v12, %v2120_v17  ;;  %v2747_v13 = vpop.f32.mrb[58].mxu1 }
 0x599   : > { %v2123_v43 = vpop.f32.mrb[59].mxu1  ;;  %v2132_v14 = vadd.f32 %v2747_v13, %v4047_v12  ;;  %v2201_v51 = vmax.f32 %v2129_v26, 0.0 }
 0x59a   : > { %v2248_v20 = vadd.f32 %v2247_v35, %v2246_v28  ;;  %v2124_v49 = vadd.f32 %v4047_v12, %v2123_v43  ;;  %v2199_v34 = vmax.f32 %v2121_v24, 0.0 }
 0x59b   : > { %v2202_v50 = vmax.f32 %v2132_v14, 0.0 }
 0x59c   : > { %v2249_v56 = vrot.slane %v2248_v20, 1  ;;  %v2200_v22 = vmax.f32 %v2124_v49, 0.0 }
 0x59e   : > { %v2250_v40 = vadd.f32 %v2249_v56, %v2248_v20  ;;  %v2251_v31 = vadd.f32 %v2200_v22, %v2199_v34 }
 0x5a0   : > { %v2291_v10 = vmul.f32 0.03125, %v2250_v40  ;;  %v2252_v55 = vadd.f32 %v2251_v31, %v2201_v51 }
 0x5a2   : > { %v2253_v61 = vadd.f32 %v2252_v55, %v2202_v50  ;;  %v2309_v53 = vsel %vm2308_vm3, %v2291_v10, %v2307_v23 }
 0x5a4   : > { %v2254_v7 = vrot.slane %v2253_v61, 4 }
 0x5a6   : > { %v2255_v57 = vadd.f32 %v2254_v7, %v2253_v61  ;;  %v2750_v59 = vpop.f32.mrb[60].mxu1 }
 0x5a7   : > { %v2136_v15 = vpop.f32.mrb[61].mxu1  ;;  %v2145_v5 = vadd.f32 %v2750_v59, %v4047_v12 }
 0x5a8   : > { %v2256_v18 = vrot.slane %v2255_v57, 2  ;;  %v2137_v0 = vadd.f32 %v4047_v12, %v2136_v15  ;;  %v2751_v54 = vpop.f32.mrb[62].mxu1 }
 0x5a9   : > { %v2139_v21 = vpop.f32.mrb[63].mxu1  ;;  %v2148_v42 = vadd.f32 %v2751_v54, %v4047_v12  ;;  %v2205_v2 = vmax.f32 %v2145_v5, 0.0 }
 0x5aa   : > { %v2257_v46 = vadd.f32 %v2256_v18, %v2255_v57  ;;  %v2140_v37 = vadd.f32 %v4047_v12, %v2139_v21  ;;  %v2203_v19 = vmax.f32 %v2137_v0, 0.0 }
 0x5ab   : > { %v2206_v62 = vmax.f32 %v2148_v42, 0.0 }
 0x5ac   : > { %v2258_v16 = vrot.slane %v2257_v46, 1  ;;  %v2204_v60 = vmax.f32 %v2140_v37, 0.0 }
 0x5ae   : > { %v2259_v6 = vadd.f32 %v2258_v16, %v2257_v46  ;;  %v2260_v39 = vadd.f32 %v2204_v60, %v2203_v19 }
 0x5b0   : > { %v2292_v52 = vmul.f32 0.03125, %v2259_v6  ;;  %v2261_v9 = vadd.f32 %v2260_v39, %v2205_v2 }
 0x5b2   : > { %v2262_v1 = vadd.f32 %v2261_v9, %v2206_v62  ;;  %v2311_v45 = vsel %vm2310_vm4, %v2292_v52, %v2309_v53 }
 0x5b4   : > { %v2263_v48 = vrot.slane %v2262_v1, 4 }
 0x5b6   : > { %v2264_v58 = vadd.f32 %v2263_v48, %v2262_v1  ;;  %v2754_v25 = vpop.f32.mrb[64].mxu1 }
 0x5b7   : > { %v2152_v29 = vpop.f32.mrb[65].mxu1  ;;  %v2161_v63 = vadd.f32 %v2754_v25, %v4047_v12 }
 0x5b8   : > { %v2265_v30 = vrot.slane %v2264_v58, 2  ;;  %v2153_v11 = vadd.f32 %v4047_v12, %v2152_v29  ;;  %v2755_v8 = vpop.f32.mrb[66].mxu1 }
 0x5b9   : > { %v2155_v36 = vpop.f32.mrb[67].mxu1  ;;  %v2164_v44 = vadd.f32 %v2755_v8, %v4047_v12  ;;  %v2209_v32 = vmax.f32 %v2161_v63, 0.0 }
 0x5ba   : > { %v2266_v3 = vadd.f32 %v2265_v30, %v2264_v58  ;;  %v2156_v33 = vadd.f32 %v4047_v12, %v2155_v36  ;;  %v2207_v47 = vmax.f32 %v2153_v11, 0.0 }
 0x5bb   : > { %v2210_v38 = vmax.f32 %v2164_v44, 0.0 }
 0x5bc   : > { %v2267_v27 = vrot.slane %v2266_v3, 1  ;;  %v2208_v4 = vmax.f32 %v2156_v33, 0.0 }
 0x5be   : > { %v2268_v23 = vadd.f32 %v2267_v27, %v2266_v3  ;;  %v2269_v41 = vadd.f32 %v2208_v4, %v2207_v47 }
 0x5c0   : > { %v2293_v28 = vmul.f32 0.03125, %v2268_v23  ;;  %v2270_v17 = vadd.f32 %v2269_v41, %v2209_v32 }
 0x5c2   : > { %v2271_v35 = vadd.f32 %v2270_v17, %v2210_v38  ;;  %v2313_v24 = vsel %vm2312_vm5, %v2293_v28, %v2311_v45 }
 0x5c4   : > { %v2272_v13 = vrot.slane %v2271_v35, 4 }
 0x5c6   : > { %v2273_v43 = vadd.f32 %v2272_v13, %v2271_v35  ;;  %v2758_v20 = vpop.f32.mrb[68].mxu1 }
 0x5c7   : > { %v2168_v26 = vpop.f32.mrb[69].mxu1  ;;  %v2177_v40 = vadd.f32 %v2758_v20, %v4047_v12 }
 0x5c8   : > { %v2274_v49 = vrot.slane %v2273_v43, 2  ;;  %v2169_v56 = vadd.f32 %v4047_v12, %v2168_v26  ;;  %v2759_v34 = vpop.f32.mrb[70].mxu1 }
 0x5c9   : > { %v2171_v14 = vpop.f32.mrb[71].mxu1  ;;  %v2180_v50 = vadd.f32 %v2759_v34, %v4047_v12  ;;  %v2213_v53 = vmax.f32 %v2177_v40, 0.0 }
 0x5ca   : > { %v2275_v22 = vadd.f32 %v2274_v49, %v2273_v43  ;;  %v2172_v51 = vadd.f32 %v4047_v12, %v2171_v14  ;;  %v2211_v10 = vmax.f32 %v2169_v56, 0.0 }
 0x5cb   : > { %v2214_v59 = vmax.f32 %v2180_v50, 0.0 }
 0x5cc   : > { %v2276_v31 = vrot.slane %v2275_v22, 1  ;;  %v2212_v55 = vmax.f32 %v2172_v51, 0.0 }
 0x5ce   : > { %v2277_v61 = vadd.f32 %v2276_v31, %v2275_v22  ;;  %v2278_v7 = vadd.f32 %v2212_v55, %v2211_v10 }
 0x5d0   : > { %v2294_v57 = vmul.f32 0.03125, %v2277_v61  ;;  %v2279_v15 = vadd.f32 %v2278_v7, %v2213_v53 }
 0x5d2   : > { %v2280_v18 = vadd.f32 %v2279_v15, %v2214_v59  ;;  %v2315_v0 = vsel %vm2314_vm6, %v2294_v57, %v2313_v24 }
 0x5d4   : > { %v2281_v54 = vrot.slane %v2280_v18, 4 }
 0x5d6   : > { %v2282_v21 = vadd.f32 %v2281_v54, %v2280_v18 }
 0x5d8   : > { %v2283_v46 = vrot.slane %v2282_v21, 2 }
 0x5da   : > { %v2284_v5 = vadd.f32 %v2283_v46, %v2282_v21 }
 0x5dc   : > { %v2285_v37 = vrot.slane %v2284_v5, 1 }
 0x5de   : > { %v2286_v12 = vadd.f32 %v2285_v37, %v2284_v5 }
 0x5e0   : > { %v2295_v16 = vmul.f32 0.03125, %v2286_v12 }
 0x5e2   : > { %v2317_v19 = vsel %vm2316_vm7, %v2295_v16, %v2315_v0 }
 0x5e3   : > { %2319 = vst [vmem:[%s314_s13] sm:$0xff] %v2317_v19 }
 0x5e4   : > { %3145 = shalt.err (!%p3142_p4)
}
 0x5e5   : > { %s3146_s16 = scalar_lea.hbm %s4086_s7, 128  ;;  %s3150_s9 = scalar_lea.hbm %s4136_s6, 256 }
 0x5e6   : > { %p3147_p9 = scmp.ne.s32.totalorder %s4086_s7, %s3146_s16  ;;  %p3151_p8 = scmp.lt.u32.totalorder %s4086_s7, %s4136_s6 }
 0x5e7   : > { %p3152_p13 = scmp.lt.u32.totalorder %s3150_s9, %s3146_s16  ;;  %p3154_p10 = scmp.lt.u32.totalorder %s3146_s16, %s4086_s7 }
 0x5e8   : > { %p3148_p0 = pnand %p3147_p9, %p3404_p5 }
 0x5e9   : > { %p3153_p6 = por %p3152_p13, %p3151_p8 }
 0x5ea   : > { %p3149_p11 = pneg %p3148_p0 }
 0x5eb   : > { %p3155_p3 = por %p3154_p10, %p3153_p6 }
 0x5ed   : > { %p3156_p7 = pnand %p3155_p3, %p3149_p11 }
 0x5ef   : > { %3159 = shalt.err (!%p3156_p7)
}
 0x5f0   : > { %2790 = dma.vmem_to_hbm [thread:$0]  (%p3404_p5), %s4088_s15, 128, %s4086_s7, %s2321_s26  }
 0x5f1 PF: > { %s2346_s13 = sand.u32 1, %s3194_s21   ;;  %p4154_p12 = scmp.ne.s32.totalorder %s4141_s28, 0 }
 0x5f2   : > { %p4155_p1 = scmp.ge.s32.totalorder %s3206_s24, 2  ;;  %s2347_s20 = scalar_lea.sflag [#allocation4], %s2346_s13 }
 0x5f4   : > { %p2807_p2 = pnand %p4155_p1, %p4154_p12 }
 0x5f6   : > { %3189 = dma.done.wait (!%p2807_p2), %s2347_s20, 128  }
 0x5f7   : > { %3191 = vsyncadd (!%p2807_p2), %s2347_s20, 4294967168  ;;  %p21_p4 = scmp.ge.s32.totalorder %s3390_s14, 4   ;;  %s4156_s21 = smov %s3198_s22 }
 0x5f8   : > { %s4157_s22 = smov %s3202_s23  ;;  %s4158_s23 = smov %s3400_s17 }
 0x5f9   : > { %s4159_s24 = smov %s3390_s14  ;;  %23 = sbr.rel (!%p21_p4) target bundleno = 7 (0x7), region = 101 }
 0x600   :  { %2352 = vsyncpa [#allocation3], 1 }
 0x601   :  { %2354 = vsyncpa [#allocation3 + $0x1], 1 }
 0x602   :  { %2355 = vsyncpa [#allocation6], 1 }
 0x603   :  { %2356 = vsyncpa [#allocation9], 1 }
 0x604   :  { %2357 = vsyncpa [#allocation4], 1 }
 0x605   :  { %2359 = vsyncpa [#allocation4 + $0x1], 1 }

</bundles_post_ra>
